<compile_context>
chip_gen: v6e
topology: v6e:2x2x1
jax: 0.10.0
libtpu: 0.0.40
codegen_flags: <defaults>
</compile_context>

<pallas_src>
import functools

import jax
import jax.numpy as jnp
from jax.experimental import pallas as pl
from jax.experimental.pallas import tpu as pltpu


_LANE = 128
_SUBLANE = 8
_VMEM_LIMIT = 48 * 1024 * 1024     # safe on v5e/v6e (128 MiB) and v7x (64 MiB)
_TILE_BUDGET = 40 * 1024 * 1024    # working-set budget used to size the row tile


def _round_up(n, m):
    return (n + m - 1) // m * m


# ---------------------------------------------------------------------------
# Fast path: gather fused into the BlockSpec; LN + K-split matmul in-kernel.
# ---------------------------------------------------------------------------
def _fused_kernel(x_ref, g_ref, b_ref, w_ref, o_ref, *, eps):
    # x_ref: (th, 2, Wh, 2C)  one contiguous slab of `th` merged-token rows;
    #                         dim 1 = spatial row parity, the trailing 2C packs
    #                         the column-parity pair [w even | w odd] per token.
    # g_ref/b_ref: (1, 4C)    LayerNorm affine, channel-reordered to
    #                         [even-row half (x0,x2) | odd-row half (x1,x3)].
    # w_ref: (4C, Np)         reduction weight, rows reordered the same way,
    #                         columns zero-padded to a lane multiple.
    # o_ref: (th*Wh, Np)
    th, _, wh, c2 = x_ref.shape
    rows = th * wh
    c4 = 2 * c2

    # Wh is a multiple of 8 on this path -> these reshapes are layout-preserving.
    xe = x_ref[:, 0, :, :].reshape(rows, c2).astype(jnp.float32)   # [x0 | x2]
    xo = x_ref[:, 1, :, :].reshape(rows, c2).astype(jnp.float32)   # [x1 | x3]

    # One-pass LayerNorm statistics over the virtual 4C channel axis (f32).
    s1 = jnp.sum(xe, axis=-1, keepdims=True) + jnp.sum(xo, axis=-1, keepdims=True)
    s2 = (jnp.sum(xe * xe, axis=-1, keepdims=True)
          + jnp.sum(xo * xo, axis=-1, keepdims=True))
    mean = s1 * (1.0 / c4)
    var = jnp.maximum(s2 * (1.0 / c4) - mean * mean, 0.0)
    inv = jax.lax.rsqrt(var + eps)                                 # EUP rsqrt

    g = g_ref[...].astype(jnp.float32)
    b = b_ref[...].astype(jnp.float32)

    # Normalize + affine, keep the MXU operands in the weight's storage dtype.
    xne = ((xe - mean) * inv * g[:, :c2] + b[:, :c2]).astype(w_ref.dtype)
    xno = ((xo - mean) * inv * g[:, c2:] + b[:, c2:]).astype(w_ref.dtype)

    # K-split matmul: even-row half x top 2C weight rows + odd-row half x
    # bottom 2C rows; f32 accumulation on the MXU.
    acc = jnp.dot(xne, w_ref[:c2, :], preferred_element_type=jnp.float32)
    acc = acc + jnp.dot(xno, w_ref[c2:, :], preferred_element_type=jnp.float32)
    o_ref[...] = acc.astype(o_ref.dtype)


def _pick_row_tile(B, hh, wh, c2, n_p, itemsize, fixed_bytes):
    """Largest divisor `th` of H/2 whose per-step working set fits the budget."""
    def bytes_needed(th):
        rows = th * wh
        x_tile = 2 * rows * (2 * c2) * itemsize      # double-buffered input slab
        o_tile = 2 * rows * n_p * itemsize           # double-buffered output
        f32_tmp = 6 * rows * c2 * 4                  # f32 temporaries (rough)
        return fixed_bytes + x_tile + o_tile + f32_tmp

    # Keep >= 2 grid steps so megacore ('parallel') can split work on v7x.
    hh_cap = hh if B >= 2 else max(1, hh // 2)
    best = 1
    for th in range(1, hh_cap + 1):
        if hh % th == 0 and th * wh <= 2048 and bytes_needed(th) <= _TILE_BUDGET:
            best = th
    return best


def _reorder_params(gamma, beta, w, C, n_pad):
    """Reorder the 4C channel axis from torch's [x0,x1,x2,x3] concat order into
    [even-row half (x0,x2) | odd-row half (x1,x3)], and zero-pad the weight's
    output dim to a lane multiple (dense stores)."""
    def reorder(v):
        v = v.reshape(4, C, *v.shape[1:])
        return jnp.concatenate([v[0], v[2], v[1], v[3]], axis=0)

    g_r = reorder(gamma).reshape(1, 4 * C)
    b_r = reorder(beta).reshape(1, 4 * C)
    w_r = reorder(w)                                     # (4C, N)
    n = w.shape[1]
    if n_pad != n:
        w_r = jnp.pad(w_r, ((0, 0), (0, n_pad - n)))
    return g_r, b_r, w_r


def _fused_call(x5, g_r, b_r, w_p, *, th, eps, single_buffer_constants):
    B, hh, _, wh, c2 = x5.shape
    c4 = 2 * c2
    n_p = w_p.shape[1]
    rows = th * wh

    def const_spec(shape):
        # Grid-constant operands: single-buffer them (index never changes) so
        # the resident weight is held once in VMEM.
        if single_buffer_constants:
            return pl.BlockSpec(shape, lambda b, i: (0, 0),
                                pipeline_mode=pl.Buffered(1))
        return pl.BlockSpec(shape, lambda b, i: (0, 0))

    return pl.pallas_call(
        functools.partial(_fused_kernel, eps=eps),
        out_shape=jax.ShapeDtypeStruct((B, hh * wh, n_p), x5.dtype),
        grid_spec=pltpu.PrefetchScalarGridSpec(
            num_scalar_prefetch=0,
            grid=(B, hh // th),
            in_specs=[
                # One contiguous (th, 2, Wh, 2C) slab of raw x per step.
                # (If profiling shows exposed DMA, sweep pipeline_mode=
                #  pl.Buffered(3) here.)
                pl.BlockSpec((None, th, 2, wh, c2),
                             lambda b, i: (b, i, 0, 0, 0)),
                const_spec((1, c4)),        # gamma (reordered, resident)
                const_spec((1, c4)),        # beta  (reordered, resident)
                const_spec((c4, n_p)),      # weight (reordered, resident)
            ],
            out_specs=pl.BlockSpec((None, rows, n_p), lambda b, i: (b, i, 0)),
        ),
        compiler_params=pltpu.CompilerParams(
            dimension_semantics=("parallel", "parallel"),
            vmem_limit_bytes=_VMEM_LIMIT,
        ),
    )(x5, g_r, b_r, w_p)


@functools.partial(jax.jit,
                   static_argnames=("H", "W", "eps", "single_buffer_constants"))
def _fused_forward(x, gamma, beta, w, *, H, W, eps, single_buffer_constants):
    B, L, C = x.shape
    hh, wh = H // 2, W // 2
    n = w.shape[1]
    n_pad = _round_up(n, _LANE)

    g_r, b_r, w_r = _reorder_params(gamma, beta, w, C, n_pad)

    # Free contiguous view: (B, H/2, 2, W/2, 2C).  The 2x2 spatial gather is
    # expressed entirely through the BlockSpec -> no merged tensor in HBM.
    x5 = x.reshape(B, hh, 2, wh, 2 * C)

    fixed = (w_r.size * w_r.dtype.itemsize *
             (1 if single_buffer_constants else 2)) + 4 * (4 * C) * 4
    th = _pick_row_tile(B, hh, wh, 2 * C, n_pad, x.dtype.itemsize, fixed)

    out = _fused_call(x5, g_r, b_r, w_r, th=th, eps=eps,
                      single_buffer_constants=single_buffer_constants)
    if n_pad != n:
        out = out[:, :, :n]
    return out


# ---------------------------------------------------------------------------
# Fallback path: wrapper-side gather/concat + 2D LN+matmul kernel.
# ---------------------------------------------------------------------------
def _concat_kernel(x_ref, g_ref, b_ref, w_ref, o_ref, *, eps):
    c4 = x_ref.shape[-1]
    xf = x_ref[...].astype(jnp.float32)
    s1 = jnp.sum(xf, axis=-1, keepdims=True)
    s2 = jnp.sum(xf * xf, axis=-1, keepdims=True)
    mean = s1 * (1.0 / c4)
    var = jnp.maximum(s2 * (1.0 / c4) - mean * mean, 0.0)
    inv = jax.lax.rsqrt(var + eps)
    xn = ((xf - mean) * inv * g_ref[...].astype(jnp.float32)
          + b_ref[...].astype(jnp.float32)).astype(w_ref.dtype)
    o_ref[...] = jnp.dot(xn, w_ref[...],
                         preferred_element_type=jnp.float32).astype(o_ref.dtype)


@functools.partial(jax.jit,
                   static_argnames=("H", "W", "eps", "single_buffer_constants",
                                    "allow_fusion"))
def _concat_forward(x, gamma, beta, w, *, H, W, eps, single_buffer_constants,
                    allow_fusion):
    B, L, C = x.shape
    hh, wh = H // 2, W // 2
    m = B * hh * wh
    c4 = 4 * C
    n = w.shape[1]
    n_pad = _round_up(n, _LANE)
    w_p = jnp.pad(w, ((0, 0), (0, n_pad - n))) if n_pad != n else w

    # 2x2 gather + concat (torch slicing order).  With allow_input_fusion XLA
    # may fuse this producer into the kernel's input fetch.
    xr = x.reshape(B, H, W, C)
    x0 = xr[:, 0::2, 0::2, :]
    x1 = xr[:, 1::2, 0::2, :]
    x2 = xr[:, 0::2, 1::2, :]
    x3 = xr[:, 1::2, 1::2, :]
    x2d = jnp.concatenate([x0, x1, x2, x3], axis=-1).reshape(m, c4)

    tm = m if m <= 512 else 512          # 512 is 8-aligned; full dim otherwise
    grid = (pl.cdiv(m, tm),)             # partial last block: stores are masked

    const_kw = dict(pipeline_mode=pl.Buffered(1)) if single_buffer_constants else {}
    params = dict(dimension_semantics=("parallel",), vmem_limit_bytes=_VMEM_LIMIT)
    if allow_fusion:
        params["allow_input_fusion"] = [True, False, False, False]

    out = pl.pallas_call(
        functools.partial(_concat_kernel, eps=eps),
        out_shape=jax.ShapeDtypeStruct((m, n_pad), x.dtype),
        grid_spec=pltpu.PrefetchScalarGridSpec(
            num_scalar_prefetch=0,
            grid=grid,
            in_specs=[
                pl.BlockSpec((tm, c4), lambda i: (i, 0)),
                pl.BlockSpec((1, c4), lambda i: (0, 0), **const_kw),
                pl.BlockSpec((1, c4), lambda i: (0, 0), **const_kw),
                pl.BlockSpec((c4, n_pad), lambda i: (0, 0), **const_kw),
            ],
            out_specs=pl.BlockSpec((tm, n_pad), lambda i: (i, 0)),
        ),
        compiler_params=pltpu.CompilerParams(**params),
    )(x2d, gamma.reshape(1, c4), beta.reshape(1, c4), w_p)

    out = out[:, :n] if n_pad != n else out
    return out.reshape(B, hh * wh, n)


# ---------------------------------------------------------------------------
# Public forward
# ---------------------------------------------------------------------------
def patch_merging_pallas(x, gamma, beta, w, input_resolution, *, eps=1e-5):
    """PatchMerging_noconv forward.

    x: (B, H*W, C); gamma/beta: (4C,); w: (4C, 2C) (== torch weight.T).
    Returns (y, (H//2, W//2)) with y: (B, H//2 * W//2, 2C).
    """
    H, W = input_resolution
    B, L, C = x.shape
    assert L == H * W, "input feature has wrong size"
    assert H % 2 == 0 and W % 2 == 0, f"x size ({H}*{W}) are not even."
    out_size = (H // 2, W // 2)

    attempts = []
    if (W // 2) % _SUBLANE == 0:
        # Fast path: gather expressed through the BlockSpec (no HBM round trip).
        attempts.append(lambda: _fused_forward(
            x, gamma, beta, w, H=H, W=W, eps=eps, single_buffer_constants=True))
    # Wrapper-concat path (XLA may fuse the gather into the input fetch).
    attempts.append(lambda: _concat_forward(
        x, gamma, beta, w, H=H, W=W, eps=eps, single_buffer_constants=True,
        allow_fusion=True))
    # Maximally conservative fallback (previously validated structure).
    attempts.append(lambda: _concat_forward(
        x, gamma, beta, w, H=H, W=W, eps=eps, single_buffer_constants=False,
        allow_fusion=False))

    for attempt in attempts[:-1]:
        try:
            return attempt(), out_size
        except Exception:      # optional feature failed to lower -> fall back
            pass
    return attempts[-1](), out_size


# ---------------------------------------------------------------------------
# Params / reference / demo
# ---------------------------------------------------------------------------
def init_patch_merging_params(key, dim, dtype=jnp.float32):
    """Params matching nn.LayerNorm(4*dim) + nn.Linear(4*dim, 2*dim, bias=False).
    Linear weight stored pre-transposed as (4*dim, 2*dim).  gamma/beta perturbed
    from the torch defaults to exercise the affine path."""
    kg, kb, kw = jax.random.split(key, 3)
    c4, c2 = 4 * dim, 2 * dim
    gamma = (1.0 + 0.1 * jax.random.normal(kg, (c4,))).astype(dtype)
    beta = (0.1 * jax.random.normal(kb, (c4,))).astype(dtype)
    lim = 1.0 / float(jnp.sqrt(jnp.float32(c4)))       # nn.Linear default init
    w = jax.random.uniform(kw, (c4, c2), dtype, -lim, lim)
    return gamma, beta, w


def patch_merging_reference(x, gamma, beta, w, input_resolution, eps=1e-5):
    H, W = input_resolution
    B, L, C = x.shape
    xr = x.reshape(B, H, W, C)
    x0 = xr[:, 0::2, 0::2, :]
    x1 = xr[:, 1::2, 0::2, :]
    x2 = xr[:, 0::2, 1::2, :]
    x3 = xr[:, 1::2, 1::2, :]
    xm = jnp.concatenate([x0, x1, x2, x3], axis=-1).reshape(B, -1, 4 * C)
    mean = xm.mean(-1, keepdims=True)
    var = ((xm - mean) ** 2).mean(-1, keepdims=True)
    xn = (xm - mean) / jnp.sqrt(var + eps) * gamma + beta
    return xn @ w, (H // 2, W // 2)


if __name__ == "__main__":
    key = jax.random.PRNGKey(0)
    kx, kp = jax.random.split(key)

    # Small Swin-style input (B, H*W, C).  W/2 = 8 keeps the fused-gather path
    # sublane aligned; C=64 keeps the output lane-dense (2C = 128).
    B, H, W, C = 2, 16, 16, 64
    x = jax.random.normal(kx, (B, H * W, C), dtype=jnp.float32)
    gamma, beta, w = init_patch_merging_params(kp, C)

    out, out_size = patch_merging_pallas(x, gamma, beta, w, (H, W))
    out = jax.block_until_ready(out)

    ref, ref_size = patch_merging_reference(x, gamma, beta, w, (H, W))
    assert out.shape == (B, (H // 2) * (W // 2), 2 * C), out.shape
    assert out_size == ref_size == (H // 2, W // 2)
    max_err = float(jnp.max(jnp.abs(out - ref)))
    assert jnp.allclose(out, ref, atol=2e-3, rtol=2e-3), f"mismatch {max_err}"

    print("KERNEL_OK")
</pallas_src>

<mosaic_0001>
module attributes {stable_mosaic.version = 11 : i64} {
  func.func @_fused_kernel(%arg0: i32, %arg1: i32, %arg2: memref<1x8x2x8x128xf32, #tpu.memory_space<vmem>>, %arg3: memref<1x256xf32, #tpu.memory_space<vmem>>, %arg4: memref<1x256xf32, #tpu.memory_space<vmem>>, %arg5: memref<256x128xf32, #tpu.memory_space<vmem>>, %arg6: memref<1x64x128xf32, #tpu.memory_space<vmem>>) attributes {dimension_semantics = [#tpu.dimension_semantics<parallel>, #tpu.dimension_semantics<parallel>], iteration_bounds = array<i64: 2, 1>, scalar_prefetch = 0 : i64, scratch_operands = 0 : i64, tpu.core_type = #tpu.core_type<tc>, window_params = [{transform_indices = @transform_0, window_bounds = array<i64: 1, 8, 2, 8, 128>}, {pipeline_mode = #tpu.pipeline_mode<synchronous>, transform_indices = @transform_1, window_bounds = array<i64: 1, 256>}, {pipeline_mode = #tpu.pipeline_mode<synchronous>, transform_indices = @transform_2, window_bounds = array<i64: 1, 256>}, {pipeline_mode = #tpu.pipeline_mode<synchronous>, transform_indices = @transform_3, window_bounds = array<i64: 256, 128>}, {transform_indices = @transform_4, window_bounds = array<i64: 1, 64, 128>}]} {
    %c0 = arith.constant 0 : index
    %c0_0 = arith.constant 0 : index
    %c0_1 = arith.constant 0 : index
    %c0_2 = arith.constant 0 : index
    %c0_3 = arith.constant 0 : index
    %0 = vector.load %arg2[%c0, %c0_0, %c0_1, %c0_2, %c0_3] : memref<1x8x2x8x128xf32, #tpu.memory_space<vmem>>, vector<1x8x1x8x128xf32>
    %1 = vector.shape_cast %0 : vector<1x8x1x8x128xf32> to vector<8x8x128xf32>
    %2 = vector.shape_cast %1 : vector<8x8x128xf32> to vector<64x128xf32>
    %c0_4 = arith.constant 0 : index
    %c0_5 = arith.constant 0 : index
    %c1 = arith.constant 1 : index
    %c0_6 = arith.constant 0 : index
    %c0_7 = arith.constant 0 : index
    %3 = vector.load %arg2[%c0_4, %c0_5, %c1, %c0_6, %c0_7] : memref<1x8x2x8x128xf32, #tpu.memory_space<vmem>>, vector<1x8x1x8x128xf32>
    %4 = vector.shape_cast %3 : vector<1x8x1x8x128xf32> to vector<8x8x128xf32>
    %5 = vector.shape_cast %4 : vector<8x8x128xf32> to vector<64x128xf32>
    %cst = arith.constant dense<0.000000e+00> : vector<64xf32>
    %6 = vector.multi_reduction <add>, %2, %cst [1] : vector<64x128xf32> to vector<64xf32>
    %7 = vector.shape_cast %6 : vector<64xf32> to vector<64x1xf32>
    %cst_8 = arith.constant dense<0.000000e+00> : vector<64xf32>
    %8 = vector.multi_reduction <add>, %5, %cst_8 [1] : vector<64x128xf32> to vector<64xf32>
    %9 = vector.shape_cast %8 : vector<64xf32> to vector<64x1xf32>
    %10 = arith.addf %7, %9 : vector<64x1xf32>
    %11 = arith.mulf %2, %2 : vector<64x128xf32>
    %cst_9 = arith.constant dense<0.000000e+00> : vector<64xf32>
    %12 = vector.multi_reduction <add>, %11, %cst_9 [1] : vector<64x128xf32> to vector<64xf32>
    %13 = vector.shape_cast %12 : vector<64xf32> to vector<64x1xf32>
    %14 = arith.mulf %5, %5 : vector<64x128xf32>
    %cst_10 = arith.constant dense<0.000000e+00> : vector<64xf32>
    %15 = vector.multi_reduction <add>, %14, %cst_10 [1] : vector<64x128xf32> to vector<64xf32>
    %16 = vector.shape_cast %15 : vector<64xf32> to vector<64x1xf32>
    %17 = arith.addf %13, %16 : vector<64x1xf32>
    %cst_11 = arith.constant 3.906250e-03 : f32
    %18 = vector.broadcast %cst_11 : f32 to vector<64x1xf32>
    %19 = arith.mulf %10, %18 : vector<64x1xf32>
    %cst_12 = arith.constant 3.906250e-03 : f32
    %20 = vector.broadcast %cst_12 : f32 to vector<64x1xf32>
    %21 = arith.mulf %17, %20 : vector<64x1xf32>
    %22 = arith.mulf %19, %19 : vector<64x1xf32>
    %23 = arith.subf %21, %22 : vector<64x1xf32>
    %cst_13 = arith.constant 0.000000e+00 : f32
    %24 = vector.broadcast %cst_13 : f32 to vector<64x1xf32>
    %25 = arith.maximumf %23, %24 : vector<64x1xf32>
    %cst_14 = arith.constant 9.99999974E-6 : f32
    %26 = vector.broadcast %cst_14 : f32 to vector<64x1xf32>
    %27 = arith.addf %25, %26 : vector<64x1xf32>
    %28 = math.rsqrt %27 : vector<64x1xf32>
    %c0_15 = arith.constant 0 : index
    %c0_16 = arith.constant 0 : index
    %29 = vector.load %arg3[%c0_15, %c0_16] : memref<1x256xf32, #tpu.memory_space<vmem>>, vector<1x256xf32>
    %c0_17 = arith.constant 0 : index
    %c0_18 = arith.constant 0 : index
    %30 = vector.load %arg4[%c0_17, %c0_18] : memref<1x256xf32, #tpu.memory_space<vmem>>, vector<1x256xf32>
    %31 = vector.broadcast %19 : vector<64x1xf32> to vector<64x128xf32>
    %32 = arith.subf %2, %31 : vector<64x128xf32>
    %33 = vector.broadcast %28 : vector<64x1xf32> to vector<64x128xf32>
    %34 = arith.mulf %32, %33 : vector<64x128xf32>
    %35 = vector.extract_strided_slice %29 {offsets = [0, 0], sizes = [1, 128], strides = [1, 1]} : vector<1x256xf32> to vector<1x128xf32>
    %36 = vector.broadcast %35 : vector<1x128xf32> to vector<64x128xf32>
    %37 = arith.mulf %34, %36 : vector<64x128xf32>
    %38 = vector.extract_strided_slice %30 {offsets = [0, 0], sizes = [1, 128], strides = [1, 1]} : vector<1x256xf32> to vector<1x128xf32>
    %39 = vector.broadcast %38 : vector<1x128xf32> to vector<64x128xf32>
    %40 = arith.addf %37, %39 : vector<64x128xf32>
    %41 = vector.broadcast %19 : vector<64x1xf32> to vector<64x128xf32>
    %42 = arith.subf %5, %41 : vector<64x128xf32>
    %43 = vector.broadcast %28 : vector<64x1xf32> to vector<64x128xf32>
    %44 = arith.mulf %42, %43 : vector<64x128xf32>
    %45 = vector.extract_strided_slice %29 {offsets = [0, 128], sizes = [1, 128], strides = [1, 1]} : vector<1x256xf32> to vector<1x128xf32>
    %46 = vector.broadcast %45 : vector<1x128xf32> to vector<64x128xf32>
    %47 = arith.mulf %44, %46 : vector<64x128xf32>
    %48 = vector.extract_strided_slice %30 {offsets = [0, 128], sizes = [1, 128], strides = [1, 1]} : vector<1x256xf32> to vector<1x128xf32>
    %49 = vector.broadcast %48 : vector<1x128xf32> to vector<64x128xf32>
    %50 = arith.addf %47, %49 : vector<64x128xf32>
    %c0_19 = arith.constant 0 : index
    %c0_20 = arith.constant 0 : index
    %51 = vector.load %arg5[%c0_19, %c0_20] : memref<256x128xf32, #tpu.memory_space<vmem>>, vector<128x128xf32>
    %cst_21 = arith.constant dense<0.000000e+00> : vector<64x128xf32>
    %52 = tpu.matmul %40, %51, %cst_21 {dimension_numbers = #tpu.dot_dimension_numbers<[1], [0], [0], [1], [0, 0, 1, 1], [], []>} : vector<64x128xf32>, vector<128x128xf32>, vector<64x128xf32> -> vector<64x128xf32>
    %c128 = arith.constant 128 : index
    %c0_22 = arith.constant 0 : index
    %53 = vector.load %arg5[%c128, %c0_22] : memref<256x128xf32, #tpu.memory_space<vmem>>, vector<128x128xf32>
    %cst_23 = arith.constant dense<0.000000e+00> : vector<64x128xf32>
    %54 = tpu.matmul %50, %53, %cst_23 {dimension_numbers = #tpu.dot_dimension_numbers<[1], [0], [0], [1], [0, 0, 1, 1], [], []>} : vector<64x128xf32>, vector<128x128xf32>, vector<64x128xf32> -> vector<64x128xf32>
    %55 = arith.addf %52, %54 : vector<64x128xf32>
    %c0_24 = arith.constant 0 : index
    %c0_25 = arith.constant 0 : index
    %c0_26 = arith.constant 0 : index
    %56 = vector.load %arg6[%c0_24, %c0_25, %c0_26] : memref<1x64x128xf32, #tpu.memory_space<vmem>>, vector<1x64x128xf32>
    %57 = vector.shape_cast %56 : vector<1x64x128xf32> to vector<64x128xf32>
    %58 = vector.shape_cast %55 : vector<64x128xf32> to vector<1x64x128xf32>
    tpu.vector_store %arg6[%c0_24, %c0_25, %c0_26], %58 {strides = array<i32>} : memref<1x64x128xf32, #tpu.memory_space<vmem>>, vector<1x64x128xf32>,
    return
  }
  func.func @transform_0(%arg0: i32, %arg1: i32) -> (i32, i32, i32, i32, i32) {
    %c0_i32 = arith.constant 0 : i32
    %c0_i32_0 = arith.constant 0 : i32
    %c0_i32_1 = arith.constant 0 : i32
    %c0_i32_2 = arith.constant 0 : i32
    return %arg0, %arg1, %c0_i32, %c0_i32_0, %c0_i32_1 : i32, i32, i32, i32, i32
  }
  func.func @transform_1(%arg0: i32, %arg1: i32) -> (i32, i32) {
    %c0_i32 = arith.constant 0 : i32
    %c0_i32_0 = arith.constant 0 : i32
    %c0_i32_1 = arith.constant 0 : i32
    return %c0_i32, %c0_i32_0 : i32, i32
  }
  func.func @transform_2(%arg0: i32, %arg1: i32) -> (i32, i32) {
    %c0_i32 = arith.constant 0 : i32
    %c0_i32_0 = arith.constant 0 : i32
    %c0_i32_1 = arith.constant 0 : i32
    return %c0_i32, %c0_i32_0 : i32, i32
  }
  func.func @transform_3(%arg0: i32, %arg1: i32) -> (i32, i32) {
    %c0_i32 = arith.constant 0 : i32
    %c0_i32_0 = arith.constant 0 : i32
    %c0_i32_1 = arith.constant 0 : i32
    return %c0_i32, %c0_i32_0 : i32, i32
  }
  func.func @transform_4(%arg0: i32, %arg1: i32) -> (i32, i32, i32) {
    %c0_i32 = arith.constant 0 : i32
    %c0_i32_0 = arith.constant 0 : i32
    return %arg0, %arg1, %c0_i32 : i32, i32, i32
  }
}

module attributes {stable_mosaic.version = 11 : i64} {
  func.func @_concat_kernel(%arg0: i32, %arg1: memref<128x256xf32, #tpu.memory_space<vmem>>, %arg2: memref<1x256xf32, #tpu.memory_space<vmem>>, %arg3: memref<1x256xf32, #tpu.memory_space<vmem>>, %arg4: memref<256x128xf32, #tpu.memory_space<vmem>>, %arg5: memref<128x128xf32, #tpu.memory_space<vmem>>) attributes {dimension_semantics = [#tpu.dimension_semantics<parallel>], iteration_bounds = array<i64: 1>, scalar_prefetch = 0 : i64, scratch_operands = 0 : i64, tpu.core_type = #tpu.core_type<tc>, window_params = [{transform_indices = @transform_0, window_bounds = array<i64: 128, 256>}, {pipeline_mode = #tpu.pipeline_mode<synchronous>, transform_indices = @transform_1, window_bounds = array<i64: 1, 256>}, {pipeline_mode = #tpu.pipeline_mode<synchronous>, transform_indices = @transform_2, window_bounds = array<i64: 1, 256>}, {pipeline_mode = #tpu.pipeline_mode<synchronous>, transform_indices = @transform_3, window_bounds = array<i64: 256, 128>}, {transform_indices = @transform_4, window_bounds = array<i64: 128, 128>}]} {
    %c0 = arith.constant 0 : index
    %c0_0 = arith.constant 0 : index
    %0 = vector.load %arg1[%c0, %c0_0] : memref<128x256xf32, #tpu.memory_space<vmem>>, vector<128x256xf32>
    %cst = arith.constant dense<0.000000e+00> : vector<128xf32>
    %1 = vector.multi_reduction <add>, %0, %cst [1] : vector<128x256xf32> to vector<128xf32>
    %2 = vector.shape_cast %1 : vector<128xf32> to vector<128x1xf32>
    %3 = arith.mulf %0, %0 : vector<128x256xf32>
    %cst_1 = arith.constant dense<0.000000e+00> : vector<128xf32>
    %4 = vector.multi_reduction <add>, %3, %cst_1 [1] : vector<128x256xf32> to vector<128xf32>
    %5 = vector.shape_cast %4 : vector<128xf32> to vector<128x1xf32>
    %cst_2 = arith.constant 3.906250e-03 : f32
    %6 = vector.broadcast %cst_2 : f32 to vector<128x1xf32>
    %7 = arith.mulf %2, %6 : vector<128x1xf32>
    %cst_3 = arith.constant 3.906250e-03 : f32
    %8 = vector.broadcast %cst_3 : f32 to vector<128x1xf32>
    %9 = arith.mulf %5, %8 : vector<128x1xf32>
    %10 = arith.mulf %7, %7 : vector<128x1xf32>
    %11 = arith.subf %9, %10 : vector<128x1xf32>
    %cst_4 = arith.constant 0.000000e+00 : f32
    %12 = vector.broadcast %cst_4 : f32 to vector<128x1xf32>
    %13 = arith.maximumf %11, %12 : vector<128x1xf32>
    %cst_5 = arith.constant 9.99999974E-6 : f32
    %14 = vector.broadcast %cst_5 : f32 to vector<128x1xf32>
    %15 = arith.addf %13, %14 : vector<128x1xf32>
    %16 = math.rsqrt %15 : vector<128x1xf32>
    %17 = vector.broadcast %7 : vector<128x1xf32> to vector<128x256xf32>
    %18 = arith.subf %0, %17 : vector<128x256xf32>
    %19 = vector.broadcast %16 : vector<128x1xf32> to vector<128x256xf32>
    %20 = arith.mulf %18, %19 : vector<128x256xf32>
    %c0_6 = arith.constant 0 : index
    %c0_7 = arith.constant 0 : index
    %21 = vector.load %arg2[%c0_6, %c0_7] : memref<1x256xf32, #tpu.memory_space<vmem>>, vector<1x256xf32>
    %22 = vector.broadcast %21 : vector<1x256xf32> to vector<128x256xf32>
    %23 = arith.mulf %20, %22 : vector<128x256xf32>
    %c0_8 = arith.constant 0 : index
    %c0_9 = arith.constant 0 : index
    %24 = vector.load %arg3[%c0_8, %c0_9] : memref<1x256xf32, #tpu.memory_space<vmem>>, vector<1x256xf32>
    %25 = vector.broadcast %24 : vector<1x256xf32> to vector<128x256xf32>
    %26 = arith.addf %23, %25 : vector<128x256xf32>
    %c0_10 = arith.constant 0 : index
    %c0_11 = arith.constant 0 : index
    %27 = vector.load %arg4[%c0_10, %c0_11] : memref<256x128xf32, #tpu.memory_space<vmem>>, vector<256x128xf32>
    %cst_12 = arith.constant dense<0.000000e+00> : vector<128x128xf32>
    %28 = tpu.matmul %26, %27, %cst_12 {dimension_numbers = #tpu.dot_dimension_numbers<[1], [0], [0], [1], [0, 0, 1, 1], [], []>} : vector<128x256xf32>, vector<256x128xf32>, vector<128x128xf32> -> vector<128x128xf32>
    %c0_13 = arith.constant 0 : index
    %c0_14 = arith.constant 0 : index
    %29 = vector.load %arg5[%c0_13, %c0_14] : memref<128x128xf32, #tpu.memory_space<vmem>>, vector<128x128xf32>
    tpu.vector_store %arg5[%c0_13, %c0_14], %28 {strides = array<i32>} : memref<128x128xf32, #tpu.memory_space<vmem>>, vector<128x128xf32>,
    return
  }
  func.func @transform_0(%arg0: i32) -> (i32, i32) {
    %c0_i32 = arith.constant 0 : i32
    %c0_i32_0 = arith.constant 0 : i32
    return %arg0, %c0_i32 : i32, i32
  }
  func.func @transform_1(%arg0: i32) -> (i32, i32) {
    %c0_i32 = arith.constant 0 : i32
    %c0_i32_0 = arith.constant 0 : i32
    %c0_i32_1 = arith.constant 0 : i32
    return %c0_i32, %c0_i32_0 : i32, i32
  }
  func.func @transform_2(%arg0: i32) -> (i32, i32) {
    %c0_i32 = arith.constant 0 : i32
    %c0_i32_0 = arith.constant 0 : i32
    %c0_i32_1 = arith.constant 0 : i32
    return %c0_i32, %c0_i32_0 : i32, i32
  }
  func.func @transform_3(%arg0: i32) -> (i32, i32) {
    %c0_i32 = arith.constant 0 : i32
    %c0_i32_0 = arith.constant 0 : i32
    %c0_i32_1 = arith.constant 0 : i32
    return %c0_i32, %c0_i32_0 : i32, i32
  }
  func.func @transform_4(%arg0: i32) -> (i32, i32) {
    %c0_i32 = arith.constant 0 : i32
    %c0_i32_0 = arith.constant 0 : i32
    return %arg0, %c0_i32 : i32, i32
  }
}

module attributes {stable_mosaic.version = 11 : i64} {
  func.func @_concat_kernel(%arg0: i32, %arg1: memref<128x256xf32, #tpu.memory_space<vmem>>, %arg2: memref<1x256xf32, #tpu.memory_space<vmem>>, %arg3: memref<1x256xf32, #tpu.memory_space<vmem>>, %arg4: memref<256x128xf32, #tpu.memory_space<vmem>>, %arg5: memref<128x128xf32, #tpu.memory_space<vmem>>) attributes {dimension_semantics = [#tpu.dimension_semantics<parallel>], iteration_bounds = array<i64: 1>, scalar_prefetch = 0 : i64, scratch_operands = 0 : i64, tpu.core_type = #tpu.core_type<tc>, window_params = [{transform_indices = @transform_0, window_bounds = array<i64: 128, 256>}, {pipeline_mode = #tpu.pipeline_mode<synchronous>, transform_indices = @transform_1, window_bounds = array<i64: 1, 256>}, {pipeline_mode = #tpu.pipeline_mode<synchronous>, transform_indices = @transform_2, window_bounds = array<i64: 1, 256>}, {pipeline_mode = #tpu.pipeline_mode<synchronous>, transform_indices = @transform_3, window_bounds = array<i64: 256, 128>}, {transform_indices = @transform_4, window_bounds = array<i64: 128, 128>}]} {
    %c0 = arith.constant 0 : index
    %c0_0 = arith.constant 0 : index
    %0 = vector.load %arg1[%c0, %c0_0] : memref<128x256xf32, #tpu.memory_space<vmem>>, vector<128x256xf32>
    %cst = arith.constant dense<0.000000e+00> : vector<128xf32>
    %1 = vector.multi_reduction <add>, %0, %cst [1] : vector<128x256xf32> to vector<128xf32>
    %2 = vector.shape_cast %1 : vector<128xf32> to vector<128x1xf32>
    %3 = arith.mulf %0, %0 : vector<128x256xf32>
    %cst_1 = arith.constant dense<0.000000e+00> : vector<128xf32>
    %4 = vector.multi_reduction <add>, %3, %cst_1 [1] : vector<128x256xf32> to vector<128xf32>
    %5 = vector.shape_cast %4 : vector<128xf32> to vector<128x1xf32>
    %cst_2 = arith.constant 3.906250e-03 : f32
    %6 = vector.broadcast %cst_2 : f32 to vector<128x1xf32>
    %7 = arith.mulf %2, %6 : vector<128x1xf32>
    %cst_3 = arith.constant 3.906250e-03 : f32
    %8 = vector.broadcast %cst_3 : f32 to vector<128x1xf32>
    %9 = arith.mulf %5, %8 : vector<128x1xf32>
    %10 = arith.mulf %7, %7 : vector<128x1xf32>
    %11 = arith.subf %9, %10 : vector<128x1xf32>
    %cst_4 = arith.constant 0.000000e+00 : f32
    %12 = vector.broadcast %cst_4 : f32 to vector<128x1xf32>
    %13 = arith.maximumf %11, %12 : vector<128x1xf32>
    %cst_5 = arith.constant 9.99999974E-6 : f32
    %14 = vector.broadcast %cst_5 : f32 to vector<128x1xf32>
    %15 = arith.addf %13, %14 : vector<128x1xf32>
    %16 = math.rsqrt %15 : vector<128x1xf32>
    %17 = vector.broadcast %7 : vector<128x1xf32> to vector<128x256xf32>
    %18 = arith.subf %0, %17 : vector<128x256xf32>
    %19 = vector.broadcast %16 : vector<128x1xf32> to vector<128x256xf32>
    %20 = arith.mulf %18, %19 : vector<128x256xf32>
    %c0_6 = arith.constant 0 : index
    %c0_7 = arith.constant 0 : index
    %21 = vector.load %arg2[%c0_6, %c0_7] : memref<1x256xf32, #tpu.memory_space<vmem>>, vector<1x256xf32>
    %22 = vector.broadcast %21 : vector<1x256xf32> to vector<128x256xf32>
    %23 = arith.mulf %20, %22 : vector<128x256xf32>
    %c0_8 = arith.constant 0 : index
    %c0_9 = arith.constant 0 : index
    %24 = vector.load %arg3[%c0_8, %c0_9] : memref<1x256xf32, #tpu.memory_space<vmem>>, vector<1x256xf32>
    %25 = vector.broadcast %24 : vector<1x256xf32> to vector<128x256xf32>
    %26 = arith.addf %23, %25 : vector<128x256xf32>
    %c0_10 = arith.constant 0 : index
    %c0_11 = arith.constant 0 : index
    %27 = vector.load %arg4[%c0_10, %c0_11] : memref<256x128xf32, #tpu.memory_space<vmem>>, vector<256x128xf32>
    %cst_12 = arith.constant dense<0.000000e+00> : vector<128x128xf32>
    %28 = tpu.matmul %26, %27, %cst_12 {dimension_numbers = #tpu.dot_dimension_numbers<[1], [0], [0], [1], [0, 0, 1, 1], [], []>} : vector<128x256xf32>, vector<256x128xf32>, vector<128x128xf32> -> vector<128x128xf32>
    %c0_13 = arith.constant 0 : index
    %c0_14 = arith.constant 0 : index
    %29 = vector.load %arg5[%c0_13, %c0_14] : memref<128x128xf32, #tpu.memory_space<vmem>>, vector<128x128xf32>
    tpu.vector_store %arg5[%c0_13, %c0_14], %28 {strides = array<i32>} : memref<128x128xf32, #tpu.memory_space<vmem>>, vector<128x128xf32>,
    return
  }
  func.func @transform_0(%arg0: i32) -> (i32, i32) {
    %c0_i32 = arith.constant 0 : i32
    %c0_i32_0 = arith.constant 0 : i32
    return %arg0, %c0_i32 : i32, i32
  }
  func.func @transform_1(%arg0: i32) -> (i32, i32) {
    %c0_i32 = arith.constant 0 : i32
    %c0_i32_0 = arith.constant 0 : i32
    %c0_i32_1 = arith.constant 0 : i32
    return %c0_i32, %c0_i32_0 : i32, i32
  }
  func.func @transform_2(%arg0: i32) -> (i32, i32) {
    %c0_i32 = arith.constant 0 : i32
    %c0_i32_0 = arith.constant 0 : i32
    %c0_i32_1 = arith.constant 0 : i32
    return %c0_i32, %c0_i32_0 : i32, i32
  }
  func.func @transform_3(%arg0: i32) -> (i32, i32) {
    %c0_i32 = arith.constant 0 : i32
    %c0_i32_0 = arith.constant 0 : i32
    %c0_i32_1 = arith.constant 0 : i32
    return %c0_i32, %c0_i32_0 : i32, i32
  }
  func.func @transform_4(%arg0: i32) -> (i32, i32) {
    %c0_i32 = arith.constant 0 : i32
    %c0_i32_0 = arith.constant 0 : i32
    return %arg0, %c0_i32 : i32, i32
  }
}

</mosaic_0001>

<bundles_post_ra>
// kernel: _concat_forward.1
= control target key start
LH: loop header
LB: loop body
LE: loop exit
PB: predicated region body
PF: predicated region fallthrough
CT: control target
= control target key end

     0   :  { %s1409_s0 = inlined_call_operand.vmem [shape: f32[128,256], index: 0, kind: input, shape index: {}]   ;;  %s1410_s1 = inlined_call_operand.vmem [shape: f32[1,256], index: 1, kind: input, shape index: {}]   ;;  %s1411_s2 = inlined_call_operand.vmem [shape: f32[1,256], index: 2, kind: input, shape index: {}]   ;;  %s1412_s3 = inlined_call_operand.vmem [shape: f32[256,128], index: 3, kind: input, shape index: {}]   ;;  %s1413_s4 = inlined_call_operand.hbm [shape: f32[128,128], index: 4, kind: output, shape index: {}]  }
   0x1   :  { %v851_v0 = vld [vmem:[%s1409_s0] sm:$0xff]  ;;  %v856_v1 = vld [vmem:[%s1409_s0 + $0x8] sm:$0xff]  ;;  %v883_v11 = vld [vmem:[%s1409_s0 + $0x10] sm:$0xff] }
   0x2   :  { %v861_v2 = vld [vmem:[%s1409_s0 + $0x80] sm:$0xff]  ;;  %v50_v3 = vadd.f32 %v856_v1, %v851_v0  ;;  %v98_v4 = vmul.f32 %v851_v0, %v851_v0  ;;  %v99_v5 = vmul.f32 %v856_v1, %v856_v1  ;;  %v872_v6 = vld [vmem:[%s1409_s0 + $0x88] sm:$0xff]  ;;  %v888_v12 = vld [vmem:[%s1409_s0 + $0x18] sm:$0xff]  ;;  %v100_v17 = vmul.f32 %v883_v11, %v883_v11 }
   0x3   :  { %v114_v7 = vmul.f32 %v861_v2, %v861_v2  ;;  %v115_v8 = vmul.f32 %v872_v6, %v872_v6  ;;  %v74_v10 = vadd.f32 %v872_v6, %v861_v2  ;;  %v893_v14 = vld [vmem:[%s1409_s0 + $0x90] sm:$0xff]  ;;  %v898_v15 = vld [vmem:[%s1409_s0 + $0x98] sm:$0xff]  ;;  %v53_v16 = vadd.f32 %v888_v12, %v883_v11 }
   0x4   :  { %51 = vadd.xlane.f32.xlu0 %v50_v3  ;;  %v130_v9 = vadd.f32 %v99_v5, %v98_v4  ;;  %v101_v18 = vmul.f32 %v888_v12, %v888_v12  ;;  %v77_v19 = vadd.f32 %v898_v15, %v893_v14  ;;  %v116_v20 = vmul.f32 %v893_v14, %v893_v14  ;;  %v473_v22 = vld [vmem:[%s1412_s3 + $0xf8] sm:$0xff] }
   0x5   :  { %v154_v13 = vadd.f32 %v115_v8, %v114_v7  ;;  %v117_v21 = vmul.f32 %v898_v15, %v898_v15 }
   0x6   :  { %131 = vadd.xlane.f32.xlu1 %v130_v9  ;;  %v133_v23 = vadd.f32 %v101_v18, %v100_v17 }
   0x8   :  { %75 = vadd.xlane.f32.xlu0 %v74_v10 }
   0xa   :  { %155 = vadd.xlane.f32.xlu1 %v154_v13 }
   0xc   :  { %54 = vadd.xlane.f32.xlu0 %v53_v16 }
   0xd   :  { %9 = vsyncpa [#allocation3], 0  ;;  %v918_v24 = vld [vmem:[%s1409_s0 + $0x20] sm:$0xff]  ;;  %v923_v25 = vld [vmem:[%s1409_s0 + $0x28] sm:$0xff]  ;;  %651 = vmatprep.subr.mxu0 %v473_v22  ;;  %v157_v27 = vadd.f32 %v117_v21, %v116_v20  ;;  %731 = vmatprep.subr.mxu1 %v473_v22 }
   0xe   :  { %v457_v26 = vld [vmem:[%s1412_s3 + $0x78] sm:$0xff]  ;;  %78 = vadd.xlane.f32.xlu1 %v77_v19  ;;  %v472_v28 = vld [vmem:[%s1412_s3 + $0xf0] sm:$0xff]  ;;  %v934_v29 = vld [vmem:[%s1409_s0 + $0xa0] sm:$0xff]  ;;  %v56_v32 = vadd.f32 %v923_v25, %v918_v24  ;;  %v102_v33 = vmul.f32 %v918_v24, %v918_v24  ;;  %v103_v34 = vmul.f32 %v923_v25, %v923_v25 }
   0xf   :  { %v939_v30 = vld [vmem:[%s1409_s0 + $0xa8] sm:$0xff]  ;;  %652 = vmatpush3.msra.mxu0 %v457_v26  ;;  %v456_v31 = vld [vmem:[%s1412_s3 + $0x70] sm:$0xff]  ;;  %v118_v38 = vmul.f32 %v934_v29, %v934_v29  ;;  %v470_v40 = vld [vmem:[%s1412_s3 + $0xe0] sm:$0xff]  ;;  %747 = vmatpush3.msra.mxu1 %v457_v26 }
  0x10   :  { %134 = vadd.xlane.f32.xlu0 %v133_v23  ;;  %v471_v35 = vld [vmem:[%s1412_s3 + $0xe8] sm:$0xff]  ;;  %653 = vmatprep.subr.mxu0 %v472_v28  ;;  %v80_v37 = vadd.f32 %v939_v30, %v934_v29  ;;  %v119_v39 = vmul.f32 %v939_v30, %v939_v30  ;;  %v136_v41 = vadd.f32 %v103_v34, %v102_v33  ;;  %v454_v42 = vld [vmem:[%s1412_s3 + $0x60] sm:$0xff]  ;;  %v971_v43 = vld [vmem:[%s1409_s0 + $0x30] sm:$0xff] }
  0x11   :  { %v455_v36 = vld [vmem:[%s1412_s3 + $0x68] sm:$0xff]  ;;  %654 = vmatpush3.msra.mxu0 %v456_v31  ;;  %v976_v44 = vld [vmem:[%s1409_s0 + $0x38] sm:$0xff]  ;;  %732 = vmatprep.subr.mxu1 %v472_v28  ;;  %v987_v48 = vld [vmem:[%s1409_s0 + $0xb0] sm:$0xff]  ;;  %v104_v51 = vmul.f32 %v971_v43, %v971_v43 }
  0x12   :  { %158 = vadd.xlane.f32.xlu1 %v157_v27  ;;  %655 = vmatprep.subr.mxu0 %v471_v35  ;;  %v469_v45 = vld [vmem:[%s1412_s3 + $0xd8] sm:$0xff]  ;;  %v160_v46 = vadd.f32 %v119_v39, %v118_v38  ;;  %v59_v50 = vadd.f32 %v976_v44, %v971_v43  ;;  %v105_v52 = vmul.f32 %v976_v44, %v976_v44  ;;  %v468_v53 = vld [vmem:[%s1412_s3 + $0xd0] sm:$0xff]  ;;  %v467_v58 = vld [vmem:[%s1412_s3 + $0xc8] sm:$0xff] }
  0x13   :  { %656 = vmatpush3.msra.mxu0 %v455_v36  ;;  %748 = vmatpush3.msra.mxu1 %v456_v31  ;;  %v453_v47 = vld [vmem:[%s1412_s3 + $0x58] sm:$0xff]  ;;  %v452_v54 = vld [vmem:[%s1412_s3 + $0x50] sm:$0xff]  ;;  %v120_v56 = vmul.f32 %v987_v48, %v987_v48  ;;  %v451_v60 = vld [vmem:[%s1412_s3 + $0x48] sm:$0xff] }
  0x14   :  { %57 = vadd.xlane.f32.xlu0 %v56_v32  ;;  %657 = vmatprep.subr.mxu0 %v470_v40  ;;  %v992_v49 = vld [vmem:[%s1409_s0 + $0xb8] sm:$0xff]  ;;  %v139_v59 = vadd.f32 %v105_v52, %v104_v51  ;;  %v1021_v61 = vld [vmem:[%s1409_s0 + $0x40] sm:$0xff]  ;;  %v1026_v62 = vld [vmem:[%s1409_s0 + $0x48] sm:$0xff] }
  0x15   :  { %658 = vmatpush3.msra.mxu0 %v454_v42  ;;  %733 = vmatprep.subr.mxu1 %v471_v35  ;;  %v83_v55 = vadd.f32 %v992_v49, %v987_v48  ;;  %v121_v57 = vmul.f32 %v992_v49, %v992_v49  ;;  %v466_v63 = vld [vmem:[%s1412_s3 + $0xc0] sm:$0xff]  ;;  %v1042_v7 = vld [vmem:[%s1409_s0 + $0xc8] sm:$0xff]  ;;  %v62_v8 = vadd.f32 %v1026_v62, %v1021_v61  ;;  %v465_v13 = vld [vmem:[%s1412_s3 + $0xb8] sm:$0xff] }
  0x16   :  { %81 = vadd.xlane.f32.xlu1 %v80_v37  ;;  %659 = vmatprep.subr.mxu0 %v469_v45  ;;  %v450_v4 = vld [vmem:[%s1412_s3 + $0x40] sm:$0xff]  ;;  %v106_v9 = vmul.f32 %v1021_v61, %v1021_v61  ;;  %v107_v10 = vmul.f32 %v1026_v62, %v1026_v62  ;;  %v449_v16 = vld [vmem:[%s1412_s3 + $0x38] sm:$0xff]  ;;  %v123_v19 = vmul.f32 %v1042_v7, %v1042_v7  ;;  %v464_v20 = vld [vmem:[%s1412_s3 + $0xb0] sm:$0xff] }
  0x17   :  { %749 = vmatpush3.msra.mxu1 %v455_v36  ;;  %660 = vmatpush3.msra.mxu0 %v453_v47  ;;  %v163_v3 = vadd.f32 %v121_v57, %v120_v56  ;;  %v1037_v5 = vld [vmem:[%s1409_s0 + $0xc0] sm:$0xff]  ;;  %v448_v22 = vld [vmem:[%s1412_s3 + $0x30] sm:$0xff]  ;;  %v1076_v26 = vld [vmem:[%s1409_s0 + $0x58] sm:$0xff] }
  0x18   :  { %137 = vadd.xlane.f32.xlu0 %v136_v41  ;;  %734 = vmatprep.subr.mxu1 %v470_v40  ;;  %v86_v17 = vadd.f32 %v1042_v7, %v1037_v5  ;;  %v122_v18 = vmul.f32 %v1037_v5, %v1037_v5  ;;  %v142_v21 = vadd.f32 %v107_v10, %v106_v9  ;;  %v1071_v23 = vld [vmem:[%s1409_s0 + $0x50] sm:$0xff]  ;;  %v463_v27 = vld [vmem:[%s1412_s3 + $0xa8] sm:$0xff]  ;;  %v1092_v33 = vld [vmem:[%s1409_s0 + $0xd8] sm:$0xff] }
  0x19   :  { %661 = vmatprep.subr.mxu0 %v468_v53  ;;  %750 = vmatpush3.msra.mxu1 %v454_v42  ;;  %v447_v31 = vld [vmem:[%s1412_s3 + $0x28] sm:$0xff]  ;;  %v1087_v32 = vld [vmem:[%s1409_s0 + $0xd0] sm:$0xff]  ;;  %v65_v34 = vadd.f32 %v1076_v26, %v1071_v23  ;;  %v108_v35 = vmul.f32 %v1071_v23, %v1071_v23  ;;  %v109_v36 = vmul.f32 %v1076_v26, %v1076_v26  ;;  %v462_v37 = vld [vmem:[%s1412_s3 + $0xa0] sm:$0xff] }
  0x1a   :  { %161 = vadd.xlane.f32.xlu1 %v160_v46  ;;  %662 = vmatpush3.msra.mxu0 %v452_v54  ;;  %v166_v28 = vadd.f32 %v123_v19, %v122_v18  ;;  %v446_v38 = vld [vmem:[%s1412_s3 + $0x20] sm:$0xff]  ;;  %v89_v39 = vadd.f32 %v1092_v33, %v1087_v32  ;;  %v124_v40 = vmul.f32 %v1087_v32, %v1087_v32  ;;  %v461_v42 = vld [vmem:[%s1412_s3 + $0x98] sm:$0xff]  ;;  %v460_v51 = vld [vmem:[%s1412_s3 + $0x90] sm:$0xff] }
  0x1b   :  { %735 = vmatprep.subr.mxu1 %v469_v45  ;;  %663 = vmatprep.subr.mxu0 %v467_v58  ;;  %v125_v41 = vmul.f32 %v1092_v33, %v1092_v33  ;;  %v145_v45 = vadd.f32 %v109_v36, %v108_v35  ;;  %v445_v46 = vld [vmem:[%s1412_s3 + $0x18] sm:$0xff]  ;;  %v442_v10 = vld [vmem:[%s1412_s3] sm:$0xff]  ;;  %v1181_v18 = vld [vmem:[%s1409_s0 + $0xf0] sm:$0xff] }
  0x1c   :  { %60 = vadd.xlane.f32.xlu0 %v59_v50  ;;  %751 = vmatpush3.msra.mxu1 %v453_v47  ;;  %v1121_v47 = vld [vmem:[%s1409_s0 + $0x60] sm:$0xff]  ;;  %v1126_v50 = vld [vmem:[%s1409_s0 + $0x68] sm:$0xff]  ;;  %v1186_v19 = vld [vmem:[%s1409_s0 + $0xf8] sm:$0xff] }
  0x1d   :  { %664 = vmatpush3.msra.mxu0 %v451_v60  ;;  %736 = vmatprep.subr.mxu1 %v468_v53  ;;  %v169_v52 = vadd.f32 %v125_v41, %v124_v40  ;;  %v444_v53 = vld [vmem:[%s1412_s3 + $0x10] sm:$0xff]  ;;  %v68_v56 = vadd.f32 %v1126_v50, %v1121_v47  ;;  %v110_v57 = vmul.f32 %v1121_v47, %v1121_v47 }
  0x1e   :  { %84 = vadd.xlane.f32.xlu1 %v83_v55  ;;  %665 = vmatprep.subr.mxu0 %v466_v63  ;;  %v1142_v55 = vld [vmem:[%s1409_s0 + $0xe8] sm:$0xff] }
  0x1f   :  { %752 = vmatpush3.msra.mxu1 %v452_v54  ;;  %666 = vmatpush3.msra.mxu0 %v450_v4  ;;  %v1137_v54 = vld [vmem:[%s1409_s0 + $0xe0] sm:$0xff] }
  0x20   :  { %140 = vadd.xlane.f32.xlu0 %v139_v59  ;;  %737 = vmatprep.subr.mxu1 %v467_v58  ;;  %v111_v58 = vmul.f32 %v1126_v50, %v1126_v50  ;;  %v459_v59 = vld [vmem:[%s1412_s3 + $0x88] sm:$0xff] }
  0x21   :  { %667 = vmatprep.subr.mxu0 %v465_v13  ;;  %753 = vmatpush3.msra.mxu1 %v451_v60  ;;  %v443_v60 = vld [vmem:[%s1412_s3 + $0x8] sm:$0xff] }
  0x22   :  { %164 = vadd.xlane.f32.xlu1 %v163_v3  ;;  %668 = vmatpush3.msra.mxu0 %v449_v16  ;;  %v126_v3 = vmul.f32 %v1137_v54, %v1137_v54  ;;  %v148_v9 = vadd.f32 %v111_v58, %v110_v57 }
  0x23   :  { %738 = vmatprep.subr.mxu1 %v466_v63  ;;  %669 = vmatprep.subr.mxu0 %v464_v20  ;;  %v92_v63 = vadd.f32 %v1142_v55, %v1137_v54 }
  0x24   :  { %63 = vadd.xlane.f32.xlu0 %v62_v8  ;;  %754 = vmatpush3.msra.mxu1 %v450_v4  ;;  %v127_v4 = vmul.f32 %v1142_v55, %v1142_v55  ;;  %v458_v8 = vld [vmem:[%s1412_s3 + $0x80] sm:$0xff] }
  0x25   :  { %670 = vmatpush3.msra.mxu0 %v448_v22  ;;  %739 = vmatprep.subr.mxu1 %v465_v13  ;;  %v1171_v13 = vld [vmem:[%s1409_s0 + $0x70] sm:$0xff] }
  0x26   :  { %87 = vadd.xlane.f32.xlu1 %v86_v17  ;;  %671 = vmatprep.subr.mxu0 %v463_v27  ;;  %v172_v17 = vadd.f32 %v127_v4, %v126_v3 }
  0x27   :  { %755 = vmatpush3.msra.mxu1 %v449_v16  ;;  %672 = vmatpush3.msra.mxu0 %v447_v31  ;;  %v1176_v16 = vld [vmem:[%s1409_s0 + $0x78] sm:$0xff] }
  0x28   :  { %143 = vadd.xlane.f32.xlu0 %v142_v21  ;;  %740 = vmatprep.subr.mxu1 %v464_v20  ;;  %v71_v20 = vadd.f32 %v1176_v16, %v1171_v13  ;;  %v112_v21 = vmul.f32 %v1171_v13, %v1171_v13 }
  0x29   :  { %673 = vmatprep.subr.mxu0 %v462_v37  ;;  %756 = vmatpush3.msra.mxu1 %v448_v22  ;;  %v113_v22 = vmul.f32 %v1176_v16, %v1176_v16 }
  0x2a   :  { %167 = vadd.xlane.f32.xlu1 %v166_v28  ;;  %674 = vmatpush3.msra.mxu0 %v446_v38  ;;  %v128_v28 = vmul.f32 %v1181_v18, %v1181_v18 }
  0x2b   :  { %741 = vmatprep.subr.mxu1 %v463_v27  ;;  %675 = vmatprep.subr.mxu0 %v461_v42  ;;  %v95_v27 = vadd.f32 %v1186_v19, %v1181_v18 }
  0x2c   :  { %66 = vadd.xlane.f32.xlu0 %v65_v34  ;;  %757 = vmatpush3.msra.mxu1 %v447_v31  ;;  %v129_v31 = vmul.f32 %v1186_v19, %v1186_v19  ;;  %v151_v34 = vadd.f32 %v113_v22, %v112_v21 }
  0x2d   :  { %676 = vmatpush3.msra.mxu0 %v445_v46  ;;  %742 = vmatprep.subr.mxu1 %v462_v37 }
  0x2e   :  { %90 = vadd.xlane.f32.xlu1 %v89_v39  ;;  %677 = vmatprep.subr.mxu0 %v460_v51  ;;  %v175_v35 = vadd.f32 %v129_v31, %v128_v28 }
  0x2f   :  { %758 = vmatpush3.msra.mxu1 %v446_v38  ;;  %678 = vmatpush3.msra.mxu0 %v444_v53 }
  0x30   :  { %146 = vadd.xlane.f32.xlu0 %v145_v45  ;;  %743 = vmatprep.subr.mxu1 %v461_v42 }
  0x31   :  { %679 = vmatprep.subr.mxu0 %v459_v59  ;;  %759 = vmatpush3.msra.mxu1 %v445_v46 }
  0x32   :  { %170 = vadd.xlane.f32.xlu1 %v169_v52  ;;  %680 = vmatpush3.msra.mxu0 %v443_v60 }
  0x33   :  { %744 = vmatprep.subr.mxu1 %v460_v51  ;;  %681 = vmatprep.subr.mxu0 %v458_v8 }
  0x34   :  { %69 = vadd.xlane.f32.xlu0 %v68_v56  ;;  %760 = vmatpush3.msra.mxu1 %v444_v53 }
  0x35   :  { %682 = vmatpush3.msra.mxu0 %v442_v10  ;;  %745 = vmatprep.subr.mxu1 %v459_v59 }
  0x36   :  { %93 = vadd.xlane.f32.xlu1 %v92_v63  ;;  %761 = vmatpush3.msra.mxu1 %v443_v60 }
  0x37   :  { %746 = vmatprep.subr.mxu1 %v458_v8 }
  0x38   :  { %149 = vadd.xlane.f32.xlu0 %v148_v9  ;;  %762 = vmatpush3.msra.mxu1 %v442_v10  ;;  %v356_v9 = vlaneseq }
  0x3a   :  { %173 = vadd.xlane.f32.xlu1 %v172_v17  ;;  %v357_v31 = vshrl.u32 %v356_v9, 7  ;;  %v398_v9 = vld [vmem:[%s1411_s2] sm:$0x3] }
  0x3c   :  { %72 = vadd.xlane.f32.xlu0 %v71_v20 }
  0x3e   :  { %96 = vadd.xlane.f32.xlu1 %v95_v27 }
  0x40   :  { %152 = vadd.xlane.f32.xlu0 %v151_v34 }
  0x42   :  { %176 = vadd.xlane.f32.xlu1 %v175_v35 }
  0x8d   :  { %v52_v36 = vpop.xlane.xlu0 %51 }
  0x8e   :  { %v1200_v37 = vmul.f32 0.00390625, %v52_v36 }
  0x8f   :  { %v132_v38 = vpop.xlane.xlu1 %131 }
  0x90   :  { %v194_v39 = vmul.f32 0.00390625, %v132_v38  ;;  %v210_v40 = vmul.f32 %v1200_v37, %v1200_v37 }
  0x91   :  { %v76_v41 = vpop.xlane.xlu0 %75 }
  0x92   :  { %v226_v42 = vsub.f32 %v194_v39, %v210_v40  ;;  %v1204_v45 = vmul.f32 0.00390625, %v76_v41 }
  0x93   :  { %v156_v46 = vpop.xlane.xlu1 %155 }
  0x94   :  { %v242_v51 = vmax.f32 %v226_v42, 0.0  ;;  %v202_v52 = vmul.f32 0.00390625, %v156_v46  ;;  %v218_v53 = vmul.f32 %v1204_v45, %v1204_v45 }
  0x95   :  { %v55_v56 = vpop.xlane.xlu0 %54 }
  0x96   :  { %v258_v57 = vadd.f32 1e-05, %v242_v51  ;;  %v1208_v58 = vmul.f32 0.00390625, %v55_v56  ;;  %v234_v59 = vsub.f32 %v202_v52, %v218_v53  ;;  %v358_v51 = vsub.s32 0, %v357_v31 }
  0x97   :  { %v79_v60 = vpop.xlane.xlu1 %78  ;;  %v362_v52 = vsub.s32 1, %v357_v31 }
  0x98   :  { %766 = vrsqrt.f32 %v258_v57  ;;  %v1210_v63 = vmul.f32 0.00390625, %v79_v60  ;;  %v250_v3 = vmax.f32 %v234_v59, 0.0  ;;  %v211_v4 = vmul.f32 %v1208_v58, %v1208_v58  ;;  %v354_v57 = vld [vmem:[%s1410_s1] sm:$0x3]  ;;  %s820_s1 = smov [#allocation2]  }
  0x99   :  { %v135_v8 = vpop.xlane.xlu0 %134  ;;  %v291_v60 = vsub.f32 %v856_v1, %v1200_v37  ;;  %s640_s2 = sshll.u32 %s820_s1, 4  ;;  %s641_s2 = int_to_ptr.vmem [resolvable:$true] %s640_s2 }
  0x9a   :  { %v195_v10 = vmul.f32 0.00390625, %v135_v8  ;;  %v266_v17 = vadd.f32 1e-05, %v250_v3  ;;  %v219_v22 = vmul.f32 %v1210_v63, %v1210_v63  ;;  %s798_s15 = scalar_lea.vmem %s641_s2, 2048  ;;  %p803_p1 = scmp.lt.s32.totalorder %s641_s2, %s641_s2 }
  0x9b   :  { %v159_v20 = vpop.xlane.xlu1 %158  ;;  %p799_p0 = scmp.ne.s32.totalorder %s641_s2, %s798_s15  ;;  %p804_p2 = scmp.lt.s32.totalorder %s798_s15, %s798_s15 }
  0x9c   :  { %v227_v21 = vsub.f32 %v195_v10, %v211_v4  ;;  %v203_v27 = vmul.f32 0.00390625, %v159_v20  ;;  %768 = vrsqrt.f32 %v266_v17  ;;  %v290_v17 = vsub.f32 %v851_v0, %v1200_v37 }
  0x9d   :  { %v58_v28 = vpop.xlane.xlu0 %57  ;;  %p805_p3 = por %p804_p2, %p803_p1 }
  0x9e   :  { %v243_v34 = vmax.f32 %v227_v21, 0.0  ;;  %v235_v35 = vsub.f32 %v203_v27, %v219_v22  ;;  %v1216_v36 = vmul.f32 0.00390625, %v58_v28  ;;  %v1234_v21 = vrot.slane %v354_v57, %v358_v51 }
  0x9f   :  { %v82_v38 = vpop.xlane.xlu1 %81  ;;  %v1236_v22 = vrot.slane %v354_v57, %v362_v52  ;;  %p806_p4 = pnand %p805_p3, %p799_p0 }
  0xa0   :  { %v259_v39 = vadd.f32 1e-05, %v243_v34  ;;  %v251_v40 = vmax.f32 %v235_v35, 0.0  ;;  %v1218_v41 = vmul.f32 0.00390625, %v82_v38  ;;  %v212_v42 = vmul.f32 %v1216_v36, %v1216_v36 }
  0xa1   :  { %v138_v46 = vpop.xlane.xlu0 %137  ;;  %v1240_v35 = vrot.slane %v398_v9, %v362_v52 }
  0xa2   :  { %770 = vrsqrt.f32 %v259_v39  ;;  %v267_v53 = vadd.f32 1e-05, %v251_v40  ;;  %v196_v56 = vmul.f32 0.00390625, %v138_v46  ;;  %v220_v4 = vmul.f32 %v1218_v41, %v1218_v41 }
  0xa3   :  { %v162_v59 = vpop.xlane.xlu1 %161 }
  0xa4   :  { %v228_v3 = vsub.f32 %v196_v56, %v212_v42  ;;  %v204_v8 = vmul.f32 0.00390625, %v162_v59  ;;  %772 = vrsqrt.f32 %v267_v53  ;;  %v1242_v42 = vrot.slane %v398_v9, %v358_v51 }
  0xa5   :  { %v767_v10 = vpop.eup %766  ;;  %v61_v20 = vpop.xlane.xlu0 %60  ;;  %v307_v51 = vsub.f32 %v872_v6, %v1204_v45 }
  0xa6   :  { %v244_v1 = vmax.f32 %v228_v3, 0.0  ;;  %v236_v27 = vsub.f32 %v204_v8, %v220_v4  ;;  %v1238_v28 = vmul.f32 0.00390625, %v61_v20  ;;  %v323_v31 = vmul.f32 %v767_v10, %v291_v60 }
  0xa7   :  { %v85_v34 = vpop.xlane.xlu1 %84  ;;  %v322_v38 = vmul.f32 %v767_v10, %v290_v17  ;;  %v306_v60 = vsub.f32 %v861_v2, %v1204_v45 }
  0xa8   :  { %v260_v39 = vadd.f32 1e-05, %v244_v1  ;;  %v252_v40 = vmax.f32 %v236_v27, 0.0  ;;  %v1244_v0 = vmul.f32 0.00390625, %v85_v34  ;;  %v213_v37 = vmul.f32 %v1238_v28, %v1238_v28 }
  0xa9   :  { %v141_v46 = vpop.xlane.xlu0 %140  ;;  %v367_v53 = vmul.f32 %v1236_v22, %v323_v31  ;;  %v366_v56 = vmul.f32 %v1234_v21, %v322_v38  ;;  %v769_v57 = vpop.eup %768 }
  0xaa   :  { %774 = vrsqrt.f32 %v260_v39  ;;  %v268_v59 = vadd.f32 1e-05, %v252_v40  ;;  %v197_v52 = vmul.f32 0.00390625, %v141_v46  ;;  %v221_v9 = vmul.f32 %v1244_v0, %v1244_v0 }
  0xab   :  { %v165_v3 = vpop.xlane.xlu1 %164  ;;  %v411_v4 = vadd.f32 %v1240_v35, %v367_v53  ;;  %v410_v17 = vadd.f32 %v1242_v42, %v366_v56  ;;  %v339_v1 = vmul.f32 %v769_v57, %v307_v51  ;;  %v338_v27 = vmul.f32 %v769_v57, %v306_v60 }
  0xac   :  { %v229_v8 = vsub.f32 %v197_v52, %v213_v37  ;;  %v205_v10 = vmul.f32 0.00390625, %v165_v3  ;;  %776 = vrsqrt.f32 %v268_v59  ;;  %v292_v40 = vsub.f32 %v883_v11, %v1208_v58 }
  0xad   :  { %538 = vmatprep.mubr.f32.mxu0 %v411_v4  ;;  %v64_v20 = vpop.xlane.xlu0 %63  ;;  %v383_v38 = vmul.f32 %v1236_v22, %v339_v1  ;;  %v382_v39 = vmul.f32 %v1234_v21, %v338_v27  ;;  %v293_v37 = vsub.f32 %v888_v12, %v1208_v58  ;;  %v308_v12 = vsub.f32 %v893_v14, %v1210_v63 }
  0xae   :  { %v245_v31 = vmax.f32 %v229_v8, 0.0  ;;  %v237_v2 = vsub.f32 %v205_v10, %v221_v9  ;;  %539 = vmatmul.mubr.f32.vlgmr.msra.gmra.mxu0 %v410_v17  ;;  %v1258_v34 = vmul.f32 0.00390625, %v64_v20  ;;  %v309_v58 = vsub.f32 %v898_v15, %v1210_v63 }
  0xaf   :  { %v771_v6 = vpop.eup %770  ;;  %v88_v45 = vpop.xlane.xlu1 %87  ;;  %v427_v57 = vadd.f32 %v1240_v35, %v383_v38  ;;  %v426_v59 = vadd.f32 %v1242_v42, %v382_v39 }
  0xb0   :  { %v261_v46 = vadd.f32 1e-05, %v245_v31  ;;  %v253_v53 = vmax.f32 %v237_v2, 0.0  ;;  %v1266_v56 = vmul.f32 0.00390625, %v88_v45  ;;  %v214_v52 = vmul.f32 %v1258_v34, %v1258_v34 }
  0xb1   :  { %v144_v60 = vpop.xlane.xlu0 %143  ;;  %v773_v51 = vpop.eup %772  ;;  %v325_v11 = vmul.f32 %v771_v6, %v293_v37  ;;  %578 = vmatprep.mubr.f32.mxu1 %v427_v57  ;;  %v324_v9 = vmul.f32 %v771_v6, %v292_v40  ;;  %v295_v57 = vsub.f32 %v923_v25, %v1216_v36  ;;  %v310_v25 = vsub.f32 %v934_v29, %v1218_v41 }
  0xb2   :  { %778 = vrsqrt.f32 %v261_v46  ;;  %v269_v3 = vadd.f32 1e-05, %v253_v53  ;;  %v198_v4 = vmul.f32 0.00390625, %v144_v60  ;;  %579 = vmatmul.mubr.f32.vlgmr.msra.gmra.mxu1 %v426_v59  ;;  %v222_v17 = vmul.f32 %v1266_v56, %v1266_v56 }
  0xb3   :  { %v168_v8 = vpop.xlane.xlu1 %167  ;;  %v369_v1 = vmul.f32 %v1236_v22, %v325_v11  ;;  %v368_v31 = vmul.f32 %v1234_v21, %v324_v9  ;;  %v341_v2 = vmul.f32 %v773_v51, %v309_v58  ;;  %v340_v14 = vmul.f32 %v773_v51, %v308_v12 }
  0xb4   :  { %v230_v10 = vsub.f32 %v198_v4, %v214_v52  ;;  %v206_v20 = vmul.f32 0.00390625, %v168_v8  ;;  %780 = vrsqrt.f32 %v269_v3  ;;  %v294_v53 = vsub.f32 %v918_v24, %v1216_v36 }
  0xb5   :  { %v67_v27 = vpop.xlane.xlu0 %66  ;;  %v413_v63 = vadd.f32 %v1240_v35, %v369_v1  ;;  %v412_v40 = vadd.f32 %v1242_v42, %v368_v31  ;;  %v385_v37 = vmul.f32 %v1236_v22, %v341_v2  ;;  %v384_v46 = vmul.f32 %v1234_v21, %v340_v14 }
  0xb6   :  { %v246_v45 = vmax.f32 %v230_v10, 0.0  ;;  %v238_v38 = vsub.f32 %v206_v20, %v222_v17  ;;  %v1280_v15 = vmul.f32 0.00390625, %v67_v27  ;;  %v311_v36 = vsub.f32 %v939_v30, %v1218_v41 }
  0xb7   :  { %v775_v6 = vpop.eup %774  ;;  %v91_v39 = vpop.xlane.xlu1 %90  ;;  %543 = vmatprep.mubr.f32.mxu0 %v413_v63  ;;  %v429_v51 = vadd.f32 %v1240_v35, %v385_v37  ;;  %v428_v3 = vadd.f32 %v1242_v42, %v384_v46  ;;  %v296_v46 = vsub.f32 %v971_v43, %v1238_v28 }
  0xb8   :  { %v262_v59 = vadd.f32 1e-05, %v246_v45  ;;  %v254_v52 = vmax.f32 %v238_v38, 0.0  ;;  %v1290_v60 = vmul.f32 0.00390625, %v91_v39  ;;  %544 = vmatmul.mubr.f32.gmra.mxu0 %v412_v40  ;;  %v215_v4 = vmul.f32 %v1280_v15, %v1280_v15 }
  0xb9   :  { %v147_v11 = vpop.xlane.xlu0 %146  ;;  %v777_v12 = vpop.eup %776  ;;  %v327_v8 = vmul.f32 %v775_v6, %v295_v57  ;;  %583 = vmatprep.mubr.f32.mxu1 %v429_v51  ;;  %v326_v10 = vmul.f32 %v775_v6, %v294_v53  ;;  %v297_v53 = vsub.f32 %v976_v44, %v1238_v28  ;;  %v312_v44 = vsub.f32 %v987_v48, %v1244_v0 }
  0xba   :  { %782 = vrsqrt.f32 %v262_v59  ;;  %v270_v24 = vadd.f32 1e-05, %v254_v52  ;;  %v199_v58 = vmul.f32 0.00390625, %v147_v11  ;;  %584 = vmatmul.mubr.f32.gmra.mxu1 %v428_v3  ;;  %v223_v20 = vmul.f32 %v1290_v60, %v1290_v60 }
  0xbb   :  { %v171_v9 = vpop.xlane.xlu1 %170  ;;  %v371_v27 = vmul.f32 %v1236_v22, %v327_v8  ;;  %v370_v2 = vmul.f32 %v1234_v21, %v326_v10  ;;  %v343_v14 = vmul.f32 %v777_v12, %v311_v36  ;;  %v342_v29 = vmul.f32 %v777_v12, %v310_v25 }
  0xbc   :  { %v231_v17 = vsub.f32 %v199_v58, %v215_v4  ;;  %v207_v1 = vmul.f32 0.00390625, %v171_v9  ;;  %784 = vrsqrt.f32 %v270_v24  ;;  %v313_v28 = vsub.f32 %v992_v49, %v1244_v0 }
  0xbd   :  { %v70_v31 = vpop.xlane.xlu0 %69  ;;  %v415_v41 = vadd.f32 %v1240_v35, %v371_v27  ;;  %v414_v39 = vadd.f32 %v1242_v42, %v370_v2  ;;  %v387_v40 = vmul.f32 %v1236_v22, %v343_v14  ;;  %v386_v37 = vmul.f32 %v1234_v21, %v342_v29 }
  0xbe   :  { %v247_v45 = vmax.f32 %v231_v17, 0.0  ;;  %v239_v38 = vsub.f32 %v207_v1, %v223_v20  ;;  %v1304_v30 = vmul.f32 0.00390625, %v70_v31 }
  0xbf   :  { %v779_v63 = vpop.eup %778  ;;  %v94_v6 = vpop.xlane.xlu1 %93  ;;  %548 = vmatprep.mubr.f32.mxu0 %v415_v41  ;;  %v431_v51 = vadd.f32 %v1240_v35, %v387_v40  ;;  %v430_v3 = vadd.f32 %v1242_v42, %v386_v37 }
  0xc0   :  { %v263_v57 = vadd.f32 1e-05, %v247_v45  ;;  %v255_v59 = vmax.f32 %v239_v38, 0.0  ;;  %v1314_v52 = vmul.f32 0.00390625, %v94_v6  ;;  %549 = vmatmul.mubr.f32.gmra.mxu0 %v414_v39  ;;  %v216_v4 = vmul.f32 %v1304_v30, %v1304_v30 }
  0xc1   :  { %v150_v11 = vpop.xlane.xlu0 %149  ;;  %v781_v12 = vpop.eup %780  ;;  %v329_v58 = vmul.f32 %v779_v63, %v297_v53  ;;  %588 = vmatprep.mubr.f32.mxu1 %v431_v51  ;;  %v328_v36 = vmul.f32 %v779_v63, %v296_v46  ;;  %v298_v63 = vsub.f32 %v1021_v61, %v1258_v34  ;;  %v299_v6 = vsub.f32 %v1026_v62, %v1258_v34 }
  0xc2   :  { %786 = vrsqrt.f32 %v263_v57  ;;  %v271_v43 = vadd.f32 1e-05, %v255_v59  ;;  %v200_v24 = vmul.f32 0.00390625, %v150_v11  ;;  %v224_v8 = vmul.f32 %v1314_v52, %v1314_v52  ;;  %589 = vmatmul.mubr.f32.gmra.mxu1 %v430_v3 }
  0xc3   :  { %v174_v25 = vpop.xlane.xlu1 %173  ;;  %v373_v17 = vmul.f32 %v1236_v22, %v329_v58  ;;  %v372_v1 = vmul.f32 %v1234_v21, %v328_v36  ;;  %v345_v27 = vmul.f32 %v781_v12, %v313_v28  ;;  %v344_v48 = vmul.f32 %v781_v12, %v312_v44 }
  0xc4   :  { %788 = vrsqrt.f32 %v271_v43  ;;  %v232_v9 = vsub.f32 %v200_v24, %v216_v4  ;;  %v208_v10 = vmul.f32 0.00390625, %v174_v25  ;;  %v314_v62 = vsub.f32 %v1037_v5, %v1266_v56 }
  0xc5   :  { %v73_v20 = vpop.xlane.xlu0 %72  ;;  %v417_v0 = vadd.f32 %v1240_v35, %v373_v17  ;;  %v416_v45 = vadd.f32 %v1242_v42, %v372_v1  ;;  %v389_v38 = vmul.f32 %v1236_v22, %v345_v27  ;;  %v388_v41 = vmul.f32 %v1234_v21, %v344_v48 }
  0xc6   :  { %v248_v31 = vmax.f32 %v232_v9, 0.0  ;;  %v240_v2 = vsub.f32 %v208_v10, %v224_v8  ;;  %v1328_v49 = vmul.f32 0.00390625, %v73_v20  ;;  %v315_v34 = vsub.f32 %v1042_v7, %v1266_v56 }
  0xc7   :  { %v783_v14 = vpop.eup %782  ;;  %v97_v29 = vpop.xlane.xlu1 %96  ;;  %553 = vmatprep.mubr.f32.mxu0 %v417_v0  ;;  %v433_v46 = vadd.f32 %v1240_v35, %v389_v38  ;;  %v432_v53 = vadd.f32 %v1242_v42, %v388_v41  ;;  %v300_v28 = vsub.f32 %v1071_v23, %v1280_v15  ;;  %v301_v7 = vsub.f32 %v1076_v26, %v1280_v15 }
  0xc8   :  { %v264_v39 = vadd.f32 1e-05, %v248_v31  ;;  %v256_v40 = vmax.f32 %v240_v2, 0.0  ;;  %v1338_v37 = vmul.f32 0.00390625, %v97_v29  ;;  %554 = vmatmul.mubr.f32.gmra.mxu0 %v416_v45  ;;  %v217_v57 = vmul.f32 %v1328_v49, %v1328_v49 }
  0xc9   :  { %v153_v59 = vpop.xlane.xlu0 %152  ;;  %v785_v51 = vpop.eup %784  ;;  %v331_v4 = vmul.f32 %v783_v14, %v299_v6  ;;  %593 = vmatprep.mubr.f32.mxu1 %v433_v46  ;;  %v330_v43 = vmul.f32 %v783_v14, %v298_v63  ;;  %v316_v26 = vsub.f32 %v1087_v32, %v1290_v60  ;;  %v317_v15 = vsub.f32 %v1092_v33, %v1290_v60 }
  0xca   :  { %790 = vrsqrt.f32 %v264_v39  ;;  %v272_v61 = vadd.f32 1e-05, %v256_v40  ;;  %v201_v3 = vmul.f32 0.00390625, %v153_v59  ;;  %v225_v11 = vmul.f32 %v1338_v37, %v1338_v37  ;;  %594 = vmatmul.mubr.f32.gmra.mxu1 %v432_v53 }
  0xcb   :  { %v177_v12 = vpop.xlane.xlu1 %176  ;;  %v375_v44 = vmul.f32 %v1236_v22, %v331_v4  ;;  %v374_v5 = vmul.f32 %v1234_v21, %v330_v43  ;;  %v347_v8 = vmul.f32 %v785_v51, %v315_v34  ;;  %v346_v25 = vmul.f32 %v785_v51, %v314_v62 }
  0xcc   :  { %792 = vrsqrt.f32 %v272_v61  ;;  %v233_v24 = vsub.f32 %v201_v3, %v217_v57  ;;  %v209_v58 = vmul.f32 0.00390625, %v177_v12  ;;  %v302_v39 = vsub.f32 %v1121_v47, %v1304_v30 }
  0xcd   :  { %v419_v9 = vadd.f32 %v1240_v35, %v375_v44  ;;  %v418_v17 = vadd.f32 %v1242_v42, %v374_v5  ;;  %v391_v20 = vmul.f32 %v1236_v22, %v347_v8  ;;  %v390_v1 = vmul.f32 %v1234_v21, %v346_v25 }
  0xce   :  { %v249_v56 = vmax.f32 %v233_v24, 0.0  ;;  %v241_v36 = vsub.f32 %v209_v58, %v225_v11  ;;  %v303_v40 = vsub.f32 %v1126_v50, %v1304_v30  ;;  %v318_v59 = vsub.f32 %v1137_v54, %v1314_v52 }
  0xcf   :  { %v787_v10 = vpop.eup %786  ;;  %558 = vmatprep.mubr.f32.mxu0 %v419_v9  ;;  %v435_v0 = vadd.f32 %v1240_v35, %v391_v20  ;;  %v434_v14 = vadd.f32 %v1242_v42, %v390_v1  ;;  %v319_v51 = vsub.f32 %v1142_v55, %v1314_v52  ;;  %v304_v55 = vsub.f32 %v1171_v13, %v1328_v49 }
  0xd0   :  { %v265_v27 = vadd.f32 1e-05, %v249_v56  ;;  %v257_v23 = vmax.f32 %v241_v36, 0.0  ;;  %v333_v48 = vmul.f32 %v787_v10, %v301_v7  ;;  %v332_v31 = vmul.f32 %v787_v10, %v300_v28  ;;  %559 = vmatmul.mubr.f32.gmra.mxu0 %v418_v17 }
  0xd1   :  { %v789_v2 = vpop.eup %788  ;;  %598 = vmatprep.mubr.f32.mxu1 %v435_v0  ;;  %v305_v52 = vsub.f32 %v1176_v16, %v1328_v49  ;;  %v320_v44 = vsub.f32 %v1181_v18, %v1338_v37  ;;  %v321_v28 = vsub.f32 %v1186_v19, %v1338_v37 }
  0xd2   :  { %794 = vrsqrt.f32 %v265_v27  ;;  %v273_v29 = vadd.f32 1e-05, %v257_v23  ;;  %v377_v45 = vmul.f32 %v1236_v22, %v333_v48  ;;  %v376_v38 = vmul.f32 %v1234_v21, %v332_v31  ;;  %599 = vmatmul.mubr.f32.gmra.mxu1 %v434_v14 }
  0xd3   :  { %v349_v41 = vmul.f32 %v789_v2, %v317_v15  ;;  %v348_v63 = vmul.f32 %v789_v2, %v316_v26 }
  0xd4   :  { %796 = vrsqrt.f32 %v273_v29  ;;  %v421_v32 = vadd.f32 %v1240_v35, %v377_v45  ;;  %v420_v33 = vadd.f32 %v1242_v42, %v376_v38 }
  0xd5   :  { %v393_v60 = vmul.f32 %v1236_v22, %v349_v41  ;;  %v392_v6 = vmul.f32 %v1234_v21, %v348_v63 }
  0xd6   :  { %563 = vmatprep.mubr.f32.mxu0 %v421_v32 }
  0xd7   :  { %v791_v46 = vpop.eup %790  ;;  %564 = vmatmul.mubr.f32.gmra.mxu0 %v420_v33  ;;  %v437_v53 = vadd.f32 %v1240_v35, %v393_v60  ;;  %v436_v57 = vadd.f32 %v1242_v42, %v392_v6 }
  0xd8   :  { %v335_v61 = vmul.f32 %v791_v46, %v303_v40  ;;  %v334_v3 = vmul.f32 %v791_v46, %v302_v39 }
  0xd9   :  { %v793_v4 = vpop.eup %792  ;;  %603 = vmatprep.mubr.f32.mxu1 %v437_v53 }
  0xda   :  { %604 = vmatmul.mubr.f32.gmra.mxu1 %v436_v57  ;;  %v379_v47 = vmul.f32 %v1236_v22, %v335_v61  ;;  %v378_v50 = vmul.f32 %v1234_v21, %v334_v3  ;;  %v351_v30 = vmul.f32 %v793_v4, %v319_v51  ;;  %v350_v62 = vmul.f32 %v793_v4, %v318_v59 }
  0xdc   :  { %v423_v34 = vadd.f32 %v1240_v35, %v379_v47  ;;  %v422_v11 = vadd.f32 %v1242_v42, %v378_v50  ;;  %v395_v54 = vmul.f32 %v1236_v22, %v351_v30  ;;  %v394_v12 = vmul.f32 %v1234_v21, %v350_v62 }
  0xde   :  { %568 = vmatprep.mubr.f32.mxu0 %v423_v34  ;;  %v439_v43 = vadd.f32 %v1240_v35, %v395_v54  ;;  %v438_v24 = vadd.f32 %v1242_v42, %v394_v12 }
  0xdf   :  { %v795_v58 = vpop.eup %794  ;;  %569 = vmatmul.mubr.f32.gmra.mxu0 %v422_v11 }
  0xe0   :  { %608 = vmatprep.mubr.f32.mxu1 %v439_v43  ;;  %v337_v5 = vmul.f32 %v795_v58, %v305_v52  ;;  %v336_v8 = vmul.f32 %v795_v58, %v304_v55 }
  0xe1   :  { %v797_v13 = vpop.eup %796  ;;  %609 = vmatmul.mubr.f32.gmra.mxu1 %v438_v24 }
  0xe2   :  { %v381_v16 = vmul.f32 %v1236_v22, %v337_v5  ;;  %v380_v49 = vmul.f32 %v1234_v21, %v336_v8  ;;  %v353_v25 = vmul.f32 %v797_v13, %v321_v28  ;;  %v352_v7 = vmul.f32 %v797_v13, %v320_v44 }
  0xe4   :  { %v425_v56 = vadd.f32 %v1240_v35, %v381_v16  ;;  %v424_v36 = vadd.f32 %v1242_v42, %v380_v49  ;;  %v397_v18 = vmul.f32 %v1236_v22, %v353_v25  ;;  %v396_v9 = vmul.f32 %v1234_v21, %v352_v7 }
  0xe6   :  { %573 = vmatprep.mubr.f32.mxu0 %v425_v56  ;;  %v441_v19 = vadd.f32 %v1240_v35, %v397_v18  ;;  %v440_v37 = vadd.f32 %v1242_v42, %v396_v9 }
  0xe7   :  { %574 = vmatmul.mubr.f32.gmra.mxu0 %v424_v36 }
  0xe8   :  { %613 = vmatprep.mubr.f32.mxu1 %v441_v19 }
  0xe9   :  { %614 = vmatmul.mubr.f32.gmra.mxu1 %v440_v37 }
 0x16e   :  { %v683_v10 = vpop.f32.mrf.mxu0 }
 0x170   :  { %v684_v17 = vpop.f32.mrf.mxu0 }
 0x171   :  { %v685_v20 = vadd.f32 %v684_v17, %v683_v10 }
 0x172   :  { %v707_v1 = vpop.f32.mrf.mxu1 }
 0x173   :  { %619 = vst [vmem:[#allocation2] sm:$0xff] %v685_v20 }
 0x174   :  { %v708_v27 = vpop.f32.mrf.mxu1 }
 0x175   :  { %v709_v23 = vadd.f32 %v708_v27, %v707_v1 }
 0x177   :  { %627 = vst [vmem:[#allocation2 + $0x40] sm:$0xff] %v709_v23 }
 0x178   :  { %v686_v48 = vpop.f32.mrf.mxu0 }
 0x17a   :  { %v687_v22 = vpop.f32.mrf.mxu0  ;;  %v710_v21 = vpop.f32.mrf.mxu1 }
 0x17b   :  { %v688_v31 = vadd.f32 %v687_v22, %v686_v48 }
 0x17c   :  { %v711_v2 = vpop.f32.mrf.mxu1 }
 0x17d   :  { %620 = vst [vmem:[#allocation2 + $0x8] sm:$0xff] %v688_v31  ;;  %v712_v35 = vadd.f32 %v711_v2, %v710_v21 }
 0x17f   :  { %628 = vst [vmem:[#allocation2 + $0x48] sm:$0xff] %v712_v35 }
 0x180   :  { %v689_v42 = vpop.f32.mrf.mxu0 }
 0x182   :  { %v690_v26 = vpop.f32.mrf.mxu0  ;;  %v713_v0 = vpop.f32.mrf.mxu1 }
 0x183   :  { %v691_v15 = vadd.f32 %v690_v26, %v689_v42 }
 0x184   :  { %v714_v14 = vpop.f32.mrf.mxu1 }
 0x185   :  { %621 = vst [vmem:[#allocation2 + $0x10] sm:$0xff] %v691_v15  ;;  %v715_v29 = vadd.f32 %v714_v14, %v713_v0 }
 0x187   :  { %629 = vst [vmem:[#allocation2 + $0x50] sm:$0xff] %v715_v29 }
 0x188   :  { %v692_v45 = vpop.f32.mrf.mxu0 }
 0x18a   :  { %v693_v38 = vpop.f32.mrf.mxu0  ;;  %v716_v63 = vpop.f32.mrf.mxu1 }
 0x18b   :  { %v694_v41 = vadd.f32 %v693_v38, %v692_v45 }
 0x18c   :  { %v717_v32 = vpop.f32.mrf.mxu1 }
 0x18d   :  { %622 = vst [vmem:[#allocation2 + $0x18] sm:$0xff] %v694_v41  ;;  %v718_v33 = vadd.f32 %v717_v32, %v716_v63 }
 0x18f   :  { %630 = vst [vmem:[#allocation2 + $0x58] sm:$0xff] %v718_v33 }
 0x190   :  { %v695_v60 = vpop.f32.mrf.mxu0 }
 0x192   :  { %v696_v6 = vpop.f32.mrf.mxu0  ;;  %v719_v40 = vpop.f32.mrf.mxu1 }
 0x193   :  { %v697_v39 = vadd.f32 %v696_v6, %v695_v60 }
 0x194   :  { %v720_v46 = vpop.f32.mrf.mxu1 }
 0x195   :  { %623 = vst [vmem:[#allocation2 + $0x20] sm:$0xff] %v697_v39  ;;  %v721_v53 = vadd.f32 %v720_v46, %v719_v40 }
 0x197   :  { %v698_v57 = vpop.f32.mrf.mxu0  ;;  %631 = vst [vmem:[#allocation2 + $0x60] sm:$0xff] %v721_v53 }
 0x199   :  { %v699_v59 = vpop.f32.mrf.mxu0 }
 0x19a   :  { %v700_v51 = vadd.f32 %v699_v59, %v698_v57  ;;  %v722_v61 = vpop.f32.mrf.mxu1 }
 0x19c   :  { %624 = vst [vmem:[#allocation2 + $0x28] sm:$0xff] %v700_v51  ;;  %v723_v3 = vpop.f32.mrf.mxu1 }
 0x19d   :  { %v724_v4 = vadd.f32 %v723_v3, %v722_v61 }
 0x19f   :  { %632 = vst [vmem:[#allocation2 + $0x68] sm:$0xff] %v724_v4  ;;  %v701_v47 = vpop.f32.mrf.mxu0 }
 0x1a1   :  { %v702_v50 = vpop.f32.mrf.mxu0  ;;  %v725_v30 = vpop.f32.mrf.mxu1 }
 0x1a2   :  { %v703_v62 = vadd.f32 %v702_v50, %v701_v47 }
 0x1a3   :  { %v726_v34 = vpop.f32.mrf.mxu1 }
 0x1a4   :  { %625 = vst [vmem:[#allocation2 + $0x30] sm:$0xff] %v703_v62  ;;  %v727_v11 = vadd.f32 %v726_v34, %v725_v30 }
 0x1a6   :  { %633 = vst [vmem:[#allocation2 + $0x70] sm:$0xff] %v727_v11 }
 0x1a7   :  { %v704_v54 = vpop.f32.mrf.mxu0 }
 0x1a9   :  { %v705_v12 = vpop.f32.mrf.mxu0  ;;  %v728_v55 = vpop.f32.mrf.mxu1 }
 0x1aa   :  { %v706_v52 = vadd.f32 %v705_v12, %v704_v54 }
 0x1ab   :  { %v729_v43 = vpop.f32.mrf.mxu1 }
 0x1ac   :  { %626 = vst [vmem:[#allocation2 + $0x38] sm:$0xff] %v706_v52  ;;  %v730_v24 = vadd.f32 %v729_v43, %v728_v55 }
 0x1ae   :  { %634 = vst [vmem:[#allocation2 + $0x78] sm:$0xff] %v730_v24 }
 0x1af   :  { %809 = shalt.err (!%p806_p4)
}
 0x1b0   :  { %s821_s16 = smov 128   ;;  %s822_s17 = smov 8  }
 0x1b1   :  { %646 = dma.vmem_to_hbm [thread:$0]  %s641_s2, 2048, %s1413_s4, [#allocation3], %s821_s16, %s821_s16, %s822_s17  }
 0x1b2   :  { %818 = dma.done.wait [#allocation3], 2048  }
 0x1b3   :  { %819 = vsyncadd [#allocation3], 4294965248 }
 0x1b4   :  { %650 = vsyncpa [#allocation3], 1 }

// kernel: _concat_forward.1
= control target key start
LH: loop header
LB: loop body
LE: loop exit
PB: predicated region body
PF: predicated region fallthrough
CT: control target
= control target key end

     0   :  { %s1409_s0 = inlined_call_operand.vmem [shape: f32[128,256], index: 0, kind: input, shape index: {}]   ;;  %s1410_s1 = inlined_call_operand.vmem [shape: f32[1,256], index: 1, kind: input, shape index: {}]   ;;  %s1411_s2 = inlined_call_operand.vmem [shape: f32[1,256], index: 2, kind: input, shape index: {}]   ;;  %s1412_s3 = inlined_call_operand.vmem [shape: f32[256,128], index: 3, kind: input, shape index: {}]   ;;  %s1413_s4 = inlined_call_operand.hbm [shape: f32[128,128], index: 4, kind: output, shape index: {}]  }
   0x1   :  { %v851_v0 = vld [vmem:[%s1409_s0] sm:$0xff]  ;;  %v856_v1 = vld [vmem:[%s1409_s0 + $0x8] sm:$0xff]  ;;  %v883_v11 = vld [vmem:[%s1409_s0 + $0x10] sm:$0xff] }
   0x2   :  { %v861_v2 = vld [vmem:[%s1409_s0 + $0x80] sm:$0xff]  ;;  %v50_v3 = vadd.f32 %v856_v1, %v851_v0  ;;  %v98_v4 = vmul.f32 %v851_v0, %v851_v0  ;;  %v99_v5 = vmul.f32 %v856_v1, %v856_v1  ;;  %v872_v6 = vld [vmem:[%s1409_s0 + $0x88] sm:$0xff]  ;;  %v888_v12 = vld [vmem:[%s1409_s0 + $0x18] sm:$0xff]  ;;  %v100_v17 = vmul.f32 %v883_v11, %v883_v11 }
   0x3   :  { %v114_v7 = vmul.f32 %v861_v2, %v861_v2  ;;  %v115_v8 = vmul.f32 %v872_v6, %v872_v6  ;;  %v74_v10 = vadd.f32 %v872_v6, %v861_v2  ;;  %v893_v14 = vld [vmem:[%s1409_s0 + $0x90] sm:$0xff]  ;;  %v898_v15 = vld [vmem:[%s1409_s0 + $0x98] sm:$0xff]  ;;  %v53_v16 = vadd.f32 %v888_v12, %v883_v11 }
   0x4   :  { %51 = vadd.xlane.f32.xlu0 %v50_v3  ;;  %v130_v9 = vadd.f32 %v99_v5, %v98_v4  ;;  %v101_v18 = vmul.f32 %v888_v12, %v888_v12  ;;  %v77_v19 = vadd.f32 %v898_v15, %v893_v14  ;;  %v116_v20 = vmul.f32 %v893_v14, %v893_v14  ;;  %v473_v22 = vld [vmem:[%s1412_s3 + $0xf8] sm:$0xff] }
   0x5   :  { %v154_v13 = vadd.f32 %v115_v8, %v114_v7  ;;  %v117_v21 = vmul.f32 %v898_v15, %v898_v15 }
   0x6   :  { %131 = vadd.xlane.f32.xlu1 %v130_v9  ;;  %v133_v23 = vadd.f32 %v101_v18, %v100_v17 }
   0x8   :  { %75 = vadd.xlane.f32.xlu0 %v74_v10 }
   0xa   :  { %155 = vadd.xlane.f32.xlu1 %v154_v13 }
   0xc   :  { %54 = vadd.xlane.f32.xlu0 %v53_v16 }
   0xd   :  { %9 = vsyncpa [#allocation3], 0  ;;  %v918_v24 = vld [vmem:[%s1409_s0 + $0x20] sm:$0xff]  ;;  %v923_v25 = vld [vmem:[%s1409_s0 + $0x28] sm:$0xff]  ;;  %651 = vmatprep.subr.mxu0 %v473_v22  ;;  %v157_v27 = vadd.f32 %v117_v21, %v116_v20  ;;  %731 = vmatprep.subr.mxu1 %v473_v22 }
   0xe   :  { %v457_v26 = vld [vmem:[%s1412_s3 + $0x78] sm:$0xff]  ;;  %78 = vadd.xlane.f32.xlu1 %v77_v19  ;;  %v472_v28 = vld [vmem:[%s1412_s3 + $0xf0] sm:$0xff]  ;;  %v934_v29 = vld [vmem:[%s1409_s0 + $0xa0] sm:$0xff]  ;;  %v56_v32 = vadd.f32 %v923_v25, %v918_v24  ;;  %v102_v33 = vmul.f32 %v918_v24, %v918_v24  ;;  %v103_v34 = vmul.f32 %v923_v25, %v923_v25 }
   0xf   :  { %v939_v30 = vld [vmem:[%s1409_s0 + $0xa8] sm:$0xff]  ;;  %652 = vmatpush3.msra.mxu0 %v457_v26  ;;  %v456_v31 = vld [vmem:[%s1412_s3 + $0x70] sm:$0xff]  ;;  %v118_v38 = vmul.f32 %v934_v29, %v934_v29  ;;  %v470_v40 = vld [vmem:[%s1412_s3 + $0xe0] sm:$0xff]  ;;  %747 = vmatpush3.msra.mxu1 %v457_v26 }
  0x10   :  { %134 = vadd.xlane.f32.xlu0 %v133_v23  ;;  %v471_v35 = vld [vmem:[%s1412_s3 + $0xe8] sm:$0xff]  ;;  %653 = vmatprep.subr.mxu0 %v472_v28  ;;  %v80_v37 = vadd.f32 %v939_v30, %v934_v29  ;;  %v119_v39 = vmul.f32 %v939_v30, %v939_v30  ;;  %v136_v41 = vadd.f32 %v103_v34, %v102_v33  ;;  %v454_v42 = vld [vmem:[%s1412_s3 + $0x60] sm:$0xff]  ;;  %v971_v43 = vld [vmem:[%s1409_s0 + $0x30] sm:$0xff] }
  0x11   :  { %v455_v36 = vld [vmem:[%s1412_s3 + $0x68] sm:$0xff]  ;;  %654 = vmatpush3.msra.mxu0 %v456_v31  ;;  %v976_v44 = vld [vmem:[%s1409_s0 + $0x38] sm:$0xff]  ;;  %732 = vmatprep.subr.mxu1 %v472_v28  ;;  %v987_v48 = vld [vmem:[%s1409_s0 + $0xb0] sm:$0xff]  ;;  %v104_v51 = vmul.f32 %v971_v43, %v971_v43 }
  0x12   :  { %158 = vadd.xlane.f32.xlu1 %v157_v27  ;;  %655 = vmatprep.subr.mxu0 %v471_v35  ;;  %v469_v45 = vld [vmem:[%s1412_s3 + $0xd8] sm:$0xff]  ;;  %v160_v46 = vadd.f32 %v119_v39, %v118_v38  ;;  %v59_v50 = vadd.f32 %v976_v44, %v971_v43  ;;  %v105_v52 = vmul.f32 %v976_v44, %v976_v44  ;;  %v468_v53 = vld [vmem:[%s1412_s3 + $0xd0] sm:$0xff]  ;;  %v467_v58 = vld [vmem:[%s1412_s3 + $0xc8] sm:$0xff] }
  0x13   :  { %656 = vmatpush3.msra.mxu0 %v455_v36  ;;  %748 = vmatpush3.msra.mxu1 %v456_v31  ;;  %v453_v47 = vld [vmem:[%s1412_s3 + $0x58] sm:$0xff]  ;;  %v452_v54 = vld [vmem:[%s1412_s3 + $0x50] sm:$0xff]  ;;  %v120_v56 = vmul.f32 %v987_v48, %v987_v48  ;;  %v451_v60 = vld [vmem:[%s1412_s3 + $0x48] sm:$0xff] }
  0x14   :  { %57 = vadd.xlane.f32.xlu0 %v56_v32  ;;  %657 = vmatprep.subr.mxu0 %v470_v40  ;;  %v992_v49 = vld [vmem:[%s1409_s0 + $0xb8] sm:$0xff]  ;;  %v139_v59 = vadd.f32 %v105_v52, %v104_v51  ;;  %v1021_v61 = vld [vmem:[%s1409_s0 + $0x40] sm:$0xff]  ;;  %v1026_v62 = vld [vmem:[%s1409_s0 + $0x48] sm:$0xff] }
  0x15   :  { %658 = vmatpush3.msra.mxu0 %v454_v42  ;;  %733 = vmatprep.subr.mxu1 %v471_v35  ;;  %v83_v55 = vadd.f32 %v992_v49, %v987_v48  ;;  %v121_v57 = vmul.f32 %v992_v49, %v992_v49  ;;  %v466_v63 = vld [vmem:[%s1412_s3 + $0xc0] sm:$0xff]  ;;  %v1042_v7 = vld [vmem:[%s1409_s0 + $0xc8] sm:$0xff]  ;;  %v62_v8 = vadd.f32 %v1026_v62, %v1021_v61  ;;  %v465_v13 = vld [vmem:[%s1412_s3 + $0xb8] sm:$0xff] }
  0x16   :  { %81 = vadd.xlane.f32.xlu1 %v80_v37  ;;  %659 = vmatprep.subr.mxu0 %v469_v45  ;;  %v450_v4 = vld [vmem:[%s1412_s3 + $0x40] sm:$0xff]  ;;  %v106_v9 = vmul.f32 %v1021_v61, %v1021_v61  ;;  %v107_v10 = vmul.f32 %v1026_v62, %v1026_v62  ;;  %v449_v16 = vld [vmem:[%s1412_s3 + $0x38] sm:$0xff]  ;;  %v123_v19 = vmul.f32 %v1042_v7, %v1042_v7  ;;  %v464_v20 = vld [vmem:[%s1412_s3 + $0xb0] sm:$0xff] }
  0x17   :  { %749 = vmatpush3.msra.mxu1 %v455_v36  ;;  %660 = vmatpush3.msra.mxu0 %v453_v47  ;;  %v163_v3 = vadd.f32 %v121_v57, %v120_v56  ;;  %v1037_v5 = vld [vmem:[%s1409_s0 + $0xc0] sm:$0xff]  ;;  %v448_v22 = vld [vmem:[%s1412_s3 + $0x30] sm:$0xff]  ;;  %v1076_v26 = vld [vmem:[%s1409_s0 + $0x58] sm:$0xff] }
  0x18   :  { %137 = vadd.xlane.f32.xlu0 %v136_v41  ;;  %734 = vmatprep.subr.mxu1 %v470_v40  ;;  %v86_v17 = vadd.f32 %v1042_v7, %v1037_v5  ;;  %v122_v18 = vmul.f32 %v1037_v5, %v1037_v5  ;;  %v142_v21 = vadd.f32 %v107_v10, %v106_v9  ;;  %v1071_v23 = vld [vmem:[%s1409_s0 + $0x50] sm:$0xff]  ;;  %v463_v27 = vld [vmem:[%s1412_s3 + $0xa8] sm:$0xff]  ;;  %v1092_v33 = vld [vmem:[%s1409_s0 + $0xd8] sm:$0xff] }
  0x19   :  { %661 = vmatprep.subr.mxu0 %v468_v53  ;;  %750 = vmatpush3.msra.mxu1 %v454_v42  ;;  %v447_v31 = vld [vmem:[%s1412_s3 + $0x28] sm:$0xff]  ;;  %v1087_v32 = vld [vmem:[%s1409_s0 + $0xd0] sm:$0xff]  ;;  %v65_v34 = vadd.f32 %v1076_v26, %v1071_v23  ;;  %v108_v35 = vmul.f32 %v1071_v23, %v1071_v23  ;;  %v109_v36 = vmul.f32 %v1076_v26, %v1076_v26  ;;  %v462_v37 = vld [vmem:[%s1412_s3 + $0xa0] sm:$0xff] }
  0x1a   :  { %161 = vadd.xlane.f32.xlu1 %v160_v46  ;;  %662 = vmatpush3.msra.mxu0 %v452_v54  ;;  %v166_v28 = vadd.f32 %v123_v19, %v122_v18  ;;  %v446_v38 = vld [vmem:[%s1412_s3 + $0x20] sm:$0xff]  ;;  %v89_v39 = vadd.f32 %v1092_v33, %v1087_v32  ;;  %v124_v40 = vmul.f32 %v1087_v32, %v1087_v32  ;;  %v461_v42 = vld [vmem:[%s1412_s3 + $0x98] sm:$0xff]  ;;  %v460_v51 = vld [vmem:[%s1412_s3 + $0x90] sm:$0xff] }
  0x1b   :  { %735 = vmatprep.subr.mxu1 %v469_v45  ;;  %663 = vmatprep.subr.mxu0 %v467_v58  ;;  %v125_v41 = vmul.f32 %v1092_v33, %v1092_v33  ;;  %v145_v45 = vadd.f32 %v109_v36, %v108_v35  ;;  %v445_v46 = vld [vmem:[%s1412_s3 + $0x18] sm:$0xff]  ;;  %v442_v10 = vld [vmem:[%s1412_s3] sm:$0xff]  ;;  %v1181_v18 = vld [vmem:[%s1409_s0 + $0xf0] sm:$0xff] }
  0x1c   :  { %60 = vadd.xlane.f32.xlu0 %v59_v50  ;;  %751 = vmatpush3.msra.mxu1 %v453_v47  ;;  %v1121_v47 = vld [vmem:[%s1409_s0 + $0x60] sm:$0xff]  ;;  %v1126_v50 = vld [vmem:[%s1409_s0 + $0x68] sm:$0xff]  ;;  %v1186_v19 = vld [vmem:[%s1409_s0 + $0xf8] sm:$0xff] }
  0x1d   :  { %664 = vmatpush3.msra.mxu0 %v451_v60  ;;  %736 = vmatprep.subr.mxu1 %v468_v53  ;;  %v169_v52 = vadd.f32 %v125_v41, %v124_v40  ;;  %v444_v53 = vld [vmem:[%s1412_s3 + $0x10] sm:$0xff]  ;;  %v68_v56 = vadd.f32 %v1126_v50, %v1121_v47  ;;  %v110_v57 = vmul.f32 %v1121_v47, %v1121_v47 }
  0x1e   :  { %84 = vadd.xlane.f32.xlu1 %v83_v55  ;;  %665 = vmatprep.subr.mxu0 %v466_v63  ;;  %v1142_v55 = vld [vmem:[%s1409_s0 + $0xe8] sm:$0xff] }
  0x1f   :  { %752 = vmatpush3.msra.mxu1 %v452_v54  ;;  %666 = vmatpush3.msra.mxu0 %v450_v4  ;;  %v1137_v54 = vld [vmem:[%s1409_s0 + $0xe0] sm:$0xff] }
  0x20   :  { %140 = vadd.xlane.f32.xlu0 %v139_v59  ;;  %737 = vmatprep.subr.mxu1 %v467_v58  ;;  %v111_v58 = vmul.f32 %v1126_v50, %v1126_v50  ;;  %v459_v59 = vld [vmem:[%s1412_s3 + $0x88] sm:$0xff] }
  0x21   :  { %667 = vmatprep.subr.mxu0 %v465_v13  ;;  %753 = vmatpush3.msra.mxu1 %v451_v60  ;;  %v443_v60 = vld [vmem:[%s1412_s3 + $0x8] sm:$0xff] }
  0x22   :  { %164 = vadd.xlane.f32.xlu1 %v163_v3  ;;  %668 = vmatpush3.msra.mxu0 %v449_v16  ;;  %v126_v3 = vmul.f32 %v1137_v54, %v1137_v54  ;;  %v148_v9 = vadd.f32 %v111_v58, %v110_v57 }
  0x23   :  { %738 = vmatprep.subr.mxu1 %v466_v63  ;;  %669 = vmatprep.subr.mxu0 %v464_v20  ;;  %v92_v63 = vadd.f32 %v1142_v55, %v1137_v54 }
  0x24   :  { %63 = vadd.xlane.f32.xlu0 %v62_v8  ;;  %754 = vmatpush3.msra.mxu1 %v450_v4  ;;  %v127_v4 = vmul.f32 %v1142_v55, %v1142_v55  ;;  %v458_v8 = vld [vmem:[%s1412_s3 + $0x80] sm:$0xff] }
  0x25   :  { %670 = vmatpush3.msra.mxu0 %v448_v22  ;;  %739 = vmatprep.subr.mxu1 %v465_v13  ;;  %v1171_v13 = vld [vmem:[%s1409_s0 + $0x70] sm:$0xff] }
  0x26   :  { %87 = vadd.xlane.f32.xlu1 %v86_v17  ;;  %671 = vmatprep.subr.mxu0 %v463_v27  ;;  %v172_v17 = vadd.f32 %v127_v4, %v126_v3 }
  0x27   :  { %755 = vmatpush3.msra.mxu1 %v449_v16  ;;  %672 = vmatpush3.msra.mxu0 %v447_v31  ;;  %v1176_v16 = vld [vmem:[%s1409_s0 + $0x78] sm:$0xff] }
  0x28   :  { %143 = vadd.xlane.f32.xlu0 %v142_v21  ;;  %740 = vmatprep.subr.mxu1 %v464_v20  ;;  %v71_v20 = vadd.f32 %v1176_v16, %v1171_v13  ;;  %v112_v21 = vmul.f32 %v1171_v13, %v1171_v13 }
  0x29   :  { %673 = vmatprep.subr.mxu0 %v462_v37  ;;  %756 = vmatpush3.msra.mxu1 %v448_v22  ;;  %v113_v22 = vmul.f32 %v1176_v16, %v1176_v16 }
  0x2a   :  { %167 = vadd.xlane.f32.xlu1 %v166_v28  ;;  %674 = vmatpush3.msra.mxu0 %v446_v38  ;;  %v128_v28 = vmul.f32 %v1181_v18, %v1181_v18 }
  0x2b   :  { %741 = vmatprep.subr.mxu1 %v463_v27  ;;  %675 = vmatprep.subr.mxu0 %v461_v42  ;;  %v95_v27 = vadd.f32 %v1186_v19, %v1181_v18 }
  0x2c   :  { %66 = vadd.xlane.f32.xlu0 %v65_v34  ;;  %757 = vmatpush3.msra.mxu1 %v447_v31  ;;  %v129_v31 = vmul.f32 %v1186_v19, %v1186_v19  ;;  %v151_v34 = vadd.f32 %v113_v22, %v112_v21 }
  0x2d   :  { %676 = vmatpush3.msra.mxu0 %v445_v46  ;;  %742 = vmatprep.subr.mxu1 %v462_v37 }
  0x2e   :  { %90 = vadd.xlane.f32.xlu1 %v89_v39  ;;  %677 = vmatprep.subr.mxu0 %v460_v51  ;;  %v175_v35 = vadd.f32 %v129_v31, %v128_v28 }
  0x2f   :  { %758 = vmatpush3.msra.mxu1 %v446_v38  ;;  %678 = vmatpush3.msra.mxu0 %v444_v53 }
  0x30   :  { %146 = vadd.xlane.f32.xlu0 %v145_v45  ;;  %743 = vmatprep.subr.mxu1 %v461_v42 }
  0x31   :  { %679 = vmatprep.subr.mxu0 %v459_v59  ;;  %759 = vmatpush3.msra.mxu1 %v445_v46 }
  0x32   :  { %170 = vadd.xlane.f32.xlu1 %v169_v52  ;;  %680 = vmatpush3.msra.mxu0 %v443_v60 }
  0x33   :  { %744 = vmatprep.subr.mxu1 %v460_v51  ;;  %681 = vmatprep.subr.mxu0 %v458_v8 }
  0x34   :  { %69 = vadd.xlane.f32.xlu0 %v68_v56  ;;  %760 = vmatpush3.msra.mxu1 %v444_v53 }
  0x35   :  { %682 = vmatpush3.msra.mxu0 %v442_v10  ;;  %745 = vmatprep.subr.mxu1 %v459_v59 }
  0x36   :  { %93 = vadd.xlane.f32.xlu1 %v92_v63  ;;  %761 = vmatpush3.msra.mxu1 %v443_v60 }
  0x37   :  { %746 = vmatprep.subr.mxu1 %v458_v8 }
  0x38   :  { %149 = vadd.xlane.f32.xlu0 %v148_v9  ;;  %762 = vmatpush3.msra.mxu1 %v442_v10  ;;  %v356_v9 = vlaneseq }
  0x3a   :  { %173 = vadd.xlane.f32.xlu1 %v172_v17  ;;  %v357_v31 = vshrl.u32 %v356_v9, 7  ;;  %v398_v9 = vld [vmem:[%s1411_s2] sm:$0x3] }
  0x3c   :  { %72 = vadd.xlane.f32.xlu0 %v71_v20 }
  0x3e   :  { %96 = vadd.xlane.f32.xlu1 %v95_v27 }
  0x40   :  { %152 = vadd.xlane.f32.xlu0 %v151_v34 }
  0x42   :  { %176 = vadd.xlane.f32.xlu1 %v175_v35 }
  0x8d   :  { %v52_v36 = vpop.xlane.xlu0 %51 }
  0x8e   :  { %v1200_v37 = vmul.f32 0.00390625, %v52_v36 }
  0x8f   :  { %v132_v38 = vpop.xlane.xlu1 %131 }
  0x90   :  { %v194_v39 = vmul.f32 0.00390625, %v132_v38  ;;  %v210_v40 = vmul.f32 %v1200_v37, %v1200_v37 }
  0x91   :  { %v76_v41 = vpop.xlane.xlu0 %75 }
  0x92   :  { %v226_v42 = vsub.f32 %v194_v39, %v210_v40  ;;  %v1204_v45 = vmul.f32 0.00390625, %v76_v41 }
  0x93   :  { %v156_v46 = vpop.xlane.xlu1 %155 }
  0x94   :  { %v242_v51 = vmax.f32 %v226_v42, 0.0  ;;  %v202_v52 = vmul.f32 0.00390625, %v156_v46  ;;  %v218_v53 = vmul.f32 %v1204_v45, %v1204_v45 }
  0x95   :  { %v55_v56 = vpop.xlane.xlu0 %54 }
  0x96   :  { %v258_v57 = vadd.f32 1e-05, %v242_v51  ;;  %v1208_v58 = vmul.f32 0.00390625, %v55_v56  ;;  %v234_v59 = vsub.f32 %v202_v52, %v218_v53  ;;  %v358_v51 = vsub.s32 0, %v357_v31 }
  0x97   :  { %v79_v60 = vpop.xlane.xlu1 %78  ;;  %v362_v52 = vsub.s32 1, %v357_v31 }
  0x98   :  { %766 = vrsqrt.f32 %v258_v57  ;;  %v1210_v63 = vmul.f32 0.00390625, %v79_v60  ;;  %v250_v3 = vmax.f32 %v234_v59, 0.0  ;;  %v211_v4 = vmul.f32 %v1208_v58, %v1208_v58  ;;  %v354_v57 = vld [vmem:[%s1410_s1] sm:$0x3]  ;;  %s820_s1 = smov [#allocation2]  }
  0x99   :  { %v135_v8 = vpop.xlane.xlu0 %134  ;;  %v291_v60 = vsub.f32 %v856_v1, %v1200_v37  ;;  %s640_s2 = sshll.u32 %s820_s1, 4  ;;  %s641_s2 = int_to_ptr.vmem [resolvable:$true] %s640_s2 }
  0x9a   :  { %v195_v10 = vmul.f32 0.00390625, %v135_v8  ;;  %v266_v17 = vadd.f32 1e-05, %v250_v3  ;;  %v219_v22 = vmul.f32 %v1210_v63, %v1210_v63  ;;  %s798_s15 = scalar_lea.vmem %s641_s2, 2048  ;;  %p803_p1 = scmp.lt.s32.totalorder %s641_s2, %s641_s2 }
  0x9b   :  { %v159_v20 = vpop.xlane.xlu1 %158  ;;  %p799_p0 = scmp.ne.s32.totalorder %s641_s2, %s798_s15  ;;  %p804_p2 = scmp.lt.s32.totalorder %s798_s15, %s798_s15 }
  0x9c   :  { %v227_v21 = vsub.f32 %v195_v10, %v211_v4  ;;  %v203_v27 = vmul.f32 0.00390625, %v159_v20  ;;  %768 = vrsqrt.f32 %v266_v17  ;;  %v290_v17 = vsub.f32 %v851_v0, %v1200_v37 }
  0x9d   :  { %v58_v28 = vpop.xlane.xlu0 %57  ;;  %p805_p3 = por %p804_p2, %p803_p1 }
  0x9e   :  { %v243_v34 = vmax.f32 %v227_v21, 0.0  ;;  %v235_v35 = vsub.f32 %v203_v27, %v219_v22  ;;  %v1216_v36 = vmul.f32 0.00390625, %v58_v28  ;;  %v1234_v21 = vrot.slane %v354_v57, %v358_v51 }
  0x9f   :  { %v82_v38 = vpop.xlane.xlu1 %81  ;;  %v1236_v22 = vrot.slane %v354_v57, %v362_v52  ;;  %p806_p4 = pnand %p805_p3, %p799_p0 }
  0xa0   :  { %v259_v39 = vadd.f32 1e-05, %v243_v34  ;;  %v251_v40 = vmax.f32 %v235_v35, 0.0  ;;  %v1218_v41 = vmul.f32 0.00390625, %v82_v38  ;;  %v212_v42 = vmul.f32 %v1216_v36, %v1216_v36 }
  0xa1   :  { %v138_v46 = vpop.xlane.xlu0 %137  ;;  %v1240_v35 = vrot.slane %v398_v9, %v362_v52 }
  0xa2   :  { %770 = vrsqrt.f32 %v259_v39  ;;  %v267_v53 = vadd.f32 1e-05, %v251_v40  ;;  %v196_v56 = vmul.f32 0.00390625, %v138_v46  ;;  %v220_v4 = vmul.f32 %v1218_v41, %v1218_v41 }
  0xa3   :  { %v162_v59 = vpop.xlane.xlu1 %161 }
  0xa4   :  { %v228_v3 = vsub.f32 %v196_v56, %v212_v42  ;;  %v204_v8 = vmul.f32 0.00390625, %v162_v59  ;;  %772 = vrsqrt.f32 %v267_v53  ;;  %v1242_v42 = vrot.slane %v398_v9, %v358_v51 }
  0xa5   :  { %v767_v10 = vpop.eup %766  ;;  %v61_v20 = vpop.xlane.xlu0 %60  ;;  %v307_v51 = vsub.f32 %v872_v6, %v1204_v45 }
  0xa6   :  { %v244_v1 = vmax.f32 %v228_v3, 0.0  ;;  %v236_v27 = vsub.f32 %v204_v8, %v220_v4  ;;  %v1238_v28 = vmul.f32 0.00390625, %v61_v20  ;;  %v323_v31 = vmul.f32 %v767_v10, %v291_v60 }
  0xa7   :  { %v85_v34 = vpop.xlane.xlu1 %84  ;;  %v322_v38 = vmul.f32 %v767_v10, %v290_v17  ;;  %v306_v60 = vsub.f32 %v861_v2, %v1204_v45 }
  0xa8   :  { %v260_v39 = vadd.f32 1e-05, %v244_v1  ;;  %v252_v40 = vmax.f32 %v236_v27, 0.0  ;;  %v1244_v0 = vmul.f32 0.00390625, %v85_v34  ;;  %v213_v37 = vmul.f32 %v1238_v28, %v1238_v28 }
  0xa9   :  { %v141_v46 = vpop.xlane.xlu0 %140  ;;  %v367_v53 = vmul.f32 %v1236_v22, %v323_v31  ;;  %v366_v56 = vmul.f32 %v1234_v21, %v322_v38  ;;  %v769_v57 = vpop.eup %768 }
  0xaa   :  { %774 = vrsqrt.f32 %v260_v39  ;;  %v268_v59 = vadd.f32 1e-05, %v252_v40  ;;  %v197_v52 = vmul.f32 0.00390625, %v141_v46  ;;  %v221_v9 = vmul.f32 %v1244_v0, %v1244_v0 }
  0xab   :  { %v165_v3 = vpop.xlane.xlu1 %164  ;;  %v411_v4 = vadd.f32 %v1240_v35, %v367_v53  ;;  %v410_v17 = vadd.f32 %v1242_v42, %v366_v56  ;;  %v339_v1 = vmul.f32 %v769_v57, %v307_v51  ;;  %v338_v27 = vmul.f32 %v769_v57, %v306_v60 }
  0xac   :  { %v229_v8 = vsub.f32 %v197_v52, %v213_v37  ;;  %v205_v10 = vmul.f32 0.00390625, %v165_v3  ;;  %776 = vrsqrt.f32 %v268_v59  ;;  %v292_v40 = vsub.f32 %v883_v11, %v1208_v58 }
  0xad   :  { %538 = vmatprep.mubr.f32.mxu0 %v411_v4  ;;  %v64_v20 = vpop.xlane.xlu0 %63  ;;  %v383_v38 = vmul.f32 %v1236_v22, %v339_v1  ;;  %v382_v39 = vmul.f32 %v1234_v21, %v338_v27  ;;  %v293_v37 = vsub.f32 %v888_v12, %v1208_v58  ;;  %v308_v12 = vsub.f32 %v893_v14, %v1210_v63 }
  0xae   :  { %v245_v31 = vmax.f32 %v229_v8, 0.0  ;;  %v237_v2 = vsub.f32 %v205_v10, %v221_v9  ;;  %539 = vmatmul.mubr.f32.vlgmr.msra.gmra.mxu0 %v410_v17  ;;  %v1258_v34 = vmul.f32 0.00390625, %v64_v20  ;;  %v309_v58 = vsub.f32 %v898_v15, %v1210_v63 }
  0xaf   :  { %v771_v6 = vpop.eup %770  ;;  %v88_v45 = vpop.xlane.xlu1 %87  ;;  %v427_v57 = vadd.f32 %v1240_v35, %v383_v38  ;;  %v426_v59 = vadd.f32 %v1242_v42, %v382_v39 }
  0xb0   :  { %v261_v46 = vadd.f32 1e-05, %v245_v31  ;;  %v253_v53 = vmax.f32 %v237_v2, 0.0  ;;  %v1266_v56 = vmul.f32 0.00390625, %v88_v45  ;;  %v214_v52 = vmul.f32 %v1258_v34, %v1258_v34 }
  0xb1   :  { %v144_v60 = vpop.xlane.xlu0 %143  ;;  %v773_v51 = vpop.eup %772  ;;  %v325_v11 = vmul.f32 %v771_v6, %v293_v37  ;;  %578 = vmatprep.mubr.f32.mxu1 %v427_v57  ;;  %v324_v9 = vmul.f32 %v771_v6, %v292_v40  ;;  %v295_v57 = vsub.f32 %v923_v25, %v1216_v36  ;;  %v310_v25 = vsub.f32 %v934_v29, %v1218_v41 }
  0xb2   :  { %778 = vrsqrt.f32 %v261_v46  ;;  %v269_v3 = vadd.f32 1e-05, %v253_v53  ;;  %v198_v4 = vmul.f32 0.00390625, %v144_v60  ;;  %579 = vmatmul.mubr.f32.vlgmr.msra.gmra.mxu1 %v426_v59  ;;  %v222_v17 = vmul.f32 %v1266_v56, %v1266_v56 }
  0xb3   :  { %v168_v8 = vpop.xlane.xlu1 %167  ;;  %v369_v1 = vmul.f32 %v1236_v22, %v325_v11  ;;  %v368_v31 = vmul.f32 %v1234_v21, %v324_v9  ;;  %v341_v2 = vmul.f32 %v773_v51, %v309_v58  ;;  %v340_v14 = vmul.f32 %v773_v51, %v308_v12 }
  0xb4   :  { %v230_v10 = vsub.f32 %v198_v4, %v214_v52  ;;  %v206_v20 = vmul.f32 0.00390625, %v168_v8  ;;  %780 = vrsqrt.f32 %v269_v3  ;;  %v294_v53 = vsub.f32 %v918_v24, %v1216_v36 }
  0xb5   :  { %v67_v27 = vpop.xlane.xlu0 %66  ;;  %v413_v63 = vadd.f32 %v1240_v35, %v369_v1  ;;  %v412_v40 = vadd.f32 %v1242_v42, %v368_v31  ;;  %v385_v37 = vmul.f32 %v1236_v22, %v341_v2  ;;  %v384_v46 = vmul.f32 %v1234_v21, %v340_v14 }
  0xb6   :  { %v246_v45 = vmax.f32 %v230_v10, 0.0  ;;  %v238_v38 = vsub.f32 %v206_v20, %v222_v17  ;;  %v1280_v15 = vmul.f32 0.00390625, %v67_v27  ;;  %v311_v36 = vsub.f32 %v939_v30, %v1218_v41 }
  0xb7   :  { %v775_v6 = vpop.eup %774  ;;  %v91_v39 = vpop.xlane.xlu1 %90  ;;  %543 = vmatprep.mubr.f32.mxu0 %v413_v63  ;;  %v429_v51 = vadd.f32 %v1240_v35, %v385_v37  ;;  %v428_v3 = vadd.f32 %v1242_v42, %v384_v46  ;;  %v296_v46 = vsub.f32 %v971_v43, %v1238_v28 }
  0xb8   :  { %v262_v59 = vadd.f32 1e-05, %v246_v45  ;;  %v254_v52 = vmax.f32 %v238_v38, 0.0  ;;  %v1290_v60 = vmul.f32 0.00390625, %v91_v39  ;;  %544 = vmatmul.mubr.f32.gmra.mxu0 %v412_v40  ;;  %v215_v4 = vmul.f32 %v1280_v15, %v1280_v15 }
  0xb9   :  { %v147_v11 = vpop.xlane.xlu0 %146  ;;  %v777_v12 = vpop.eup %776  ;;  %v327_v8 = vmul.f32 %v775_v6, %v295_v57  ;;  %583 = vmatprep.mubr.f32.mxu1 %v429_v51  ;;  %v326_v10 = vmul.f32 %v775_v6, %v294_v53  ;;  %v297_v53 = vsub.f32 %v976_v44, %v1238_v28  ;;  %v312_v44 = vsub.f32 %v987_v48, %v1244_v0 }
  0xba   :  { %782 = vrsqrt.f32 %v262_v59  ;;  %v270_v24 = vadd.f32 1e-05, %v254_v52  ;;  %v199_v58 = vmul.f32 0.00390625, %v147_v11  ;;  %584 = vmatmul.mubr.f32.gmra.mxu1 %v428_v3  ;;  %v223_v20 = vmul.f32 %v1290_v60, %v1290_v60 }
  0xbb   :  { %v171_v9 = vpop.xlane.xlu1 %170  ;;  %v371_v27 = vmul.f32 %v1236_v22, %v327_v8  ;;  %v370_v2 = vmul.f32 %v1234_v21, %v326_v10  ;;  %v343_v14 = vmul.f32 %v777_v12, %v311_v36  ;;  %v342_v29 = vmul.f32 %v777_v12, %v310_v25 }
  0xbc   :  { %v231_v17 = vsub.f32 %v199_v58, %v215_v4  ;;  %v207_v1 = vmul.f32 0.00390625, %v171_v9  ;;  %784 = vrsqrt.f32 %v270_v24  ;;  %v313_v28 = vsub.f32 %v992_v49, %v1244_v0 }
  0xbd   :  { %v70_v31 = vpop.xlane.xlu0 %69  ;;  %v415_v41 = vadd.f32 %v1240_v35, %v371_v27  ;;  %v414_v39 = vadd.f32 %v1242_v42, %v370_v2  ;;  %v387_v40 = vmul.f32 %v1236_v22, %v343_v14  ;;  %v386_v37 = vmul.f32 %v1234_v21, %v342_v29 }
  0xbe   :  { %v247_v45 = vmax.f32 %v231_v17, 0.0  ;;  %v239_v38 = vsub.f32 %v207_v1, %v223_v20  ;;  %v1304_v30 = vmul.f32 0.00390625, %v70_v31 }
  0xbf   :  { %v779_v63 = vpop.eup %778  ;;  %v94_v6 = vpop.xlane.xlu1 %93  ;;  %548 = vmatprep.mubr.f32.mxu0 %v415_v41  ;;  %v431_v51 = vadd.f32 %v1240_v35, %v387_v40  ;;  %v430_v3 = vadd.f32 %v1242_v42, %v386_v37 }
  0xc0   :  { %v263_v57 = vadd.f32 1e-05, %v247_v45  ;;  %v255_v59 = vmax.f32 %v239_v38, 0.0  ;;  %v1314_v52 = vmul.f32 0.00390625, %v94_v6  ;;  %549 = vmatmul.mubr.f32.gmra.mxu0 %v414_v39  ;;  %v216_v4 = vmul.f32 %v1304_v30, %v1304_v30 }
  0xc1   :  { %v150_v11 = vpop.xlane.xlu0 %149  ;;  %v781_v12 = vpop.eup %780  ;;  %v329_v58 = vmul.f32 %v779_v63, %v297_v53  ;;  %588 = vmatprep.mubr.f32.mxu1 %v431_v51  ;;  %v328_v36 = vmul.f32 %v779_v63, %v296_v46  ;;  %v298_v63 = vsub.f32 %v1021_v61, %v1258_v34  ;;  %v299_v6 = vsub.f32 %v1026_v62, %v1258_v34 }
  0xc2   :  { %786 = vrsqrt.f32 %v263_v57  ;;  %v271_v43 = vadd.f32 1e-05, %v255_v59  ;;  %v200_v24 = vmul.f32 0.00390625, %v150_v11  ;;  %v224_v8 = vmul.f32 %v1314_v52, %v1314_v52  ;;  %589 = vmatmul.mubr.f32.gmra.mxu1 %v430_v3 }
  0xc3   :  { %v174_v25 = vpop.xlane.xlu1 %173  ;;  %v373_v17 = vmul.f32 %v1236_v22, %v329_v58  ;;  %v372_v1 = vmul.f32 %v1234_v21, %v328_v36  ;;  %v345_v27 = vmul.f32 %v781_v12, %v313_v28  ;;  %v344_v48 = vmul.f32 %v781_v12, %v312_v44 }
  0xc4   :  { %788 = vrsqrt.f32 %v271_v43  ;;  %v232_v9 = vsub.f32 %v200_v24, %v216_v4  ;;  %v208_v10 = vmul.f32 0.00390625, %v174_v25  ;;  %v314_v62 = vsub.f32 %v1037_v5, %v1266_v56 }
  0xc5   :  { %v73_v20 = vpop.xlane.xlu0 %72  ;;  %v417_v0 = vadd.f32 %v1240_v35, %v373_v17  ;;  %v416_v45 = vadd.f32 %v1242_v42, %v372_v1  ;;  %v389_v38 = vmul.f32 %v1236_v22, %v345_v27  ;;  %v388_v41 = vmul.f32 %v1234_v21, %v344_v48 }
  0xc6   :  { %v248_v31 = vmax.f32 %v232_v9, 0.0  ;;  %v240_v2 = vsub.f32 %v208_v10, %v224_v8  ;;  %v1328_v49 = vmul.f32 0.00390625, %v73_v20  ;;  %v315_v34 = vsub.f32 %v1042_v7, %v1266_v56 }
  0xc7   :  { %v783_v14 = vpop.eup %782  ;;  %v97_v29 = vpop.xlane.xlu1 %96  ;;  %553 = vmatprep.mubr.f32.mxu0 %v417_v0  ;;  %v433_v46 = vadd.f32 %v1240_v35, %v389_v38  ;;  %v432_v53 = vadd.f32 %v1242_v42, %v388_v41  ;;  %v300_v28 = vsub.f32 %v1071_v23, %v1280_v15  ;;  %v301_v7 = vsub.f32 %v1076_v26, %v1280_v15 }
  0xc8   :  { %v264_v39 = vadd.f32 1e-05, %v248_v31  ;;  %v256_v40 = vmax.f32 %v240_v2, 0.0  ;;  %v1338_v37 = vmul.f32 0.00390625, %v97_v29  ;;  %554 = vmatmul.mubr.f32.gmra.mxu0 %v416_v45  ;;  %v217_v57 = vmul.f32 %v1328_v49, %v1328_v49 }
  0xc9   :  { %v153_v59 = vpop.xlane.xlu0 %152  ;;  %v785_v51 = vpop.eup %784  ;;  %v331_v4 = vmul.f32 %v783_v14, %v299_v6  ;;  %593 = vmatprep.mubr.f32.mxu1 %v433_v46  ;;  %v330_v43 = vmul.f32 %v783_v14, %v298_v63  ;;  %v316_v26 = vsub.f32 %v1087_v32, %v1290_v60  ;;  %v317_v15 = vsub.f32 %v1092_v33, %v1290_v60 }
  0xca   :  { %790 = vrsqrt.f32 %v264_v39  ;;  %v272_v61 = vadd.f32 1e-05, %v256_v40  ;;  %v201_v3 = vmul.f32 0.00390625, %v153_v59  ;;  %v225_v11 = vmul.f32 %v1338_v37, %v1338_v37  ;;  %594 = vmatmul.mubr.f32.gmra.mxu1 %v432_v53 }
  0xcb   :  { %v177_v12 = vpop.xlane.xlu1 %176  ;;  %v375_v44 = vmul.f32 %v1236_v22, %v331_v4  ;;  %v374_v5 = vmul.f32 %v1234_v21, %v330_v43  ;;  %v347_v8 = vmul.f32 %v785_v51, %v315_v34  ;;  %v346_v25 = vmul.f32 %v785_v51, %v314_v62 }
  0xcc   :  { %792 = vrsqrt.f32 %v272_v61  ;;  %v233_v24 = vsub.f32 %v201_v3, %v217_v57  ;;  %v209_v58 = vmul.f32 0.00390625, %v177_v12  ;;  %v302_v39 = vsub.f32 %v1121_v47, %v1304_v30 }
  0xcd   :  { %v419_v9 = vadd.f32 %v1240_v35, %v375_v44  ;;  %v418_v17 = vadd.f32 %v1242_v42, %v374_v5  ;;  %v391_v20 = vmul.f32 %v1236_v22, %v347_v8  ;;  %v390_v1 = vmul.f32 %v1234_v21, %v346_v25 }
  0xce   :  { %v249_v56 = vmax.f32 %v233_v24, 0.0  ;;  %v241_v36 = vsub.f32 %v209_v58, %v225_v11  ;;  %v303_v40 = vsub.f32 %v1126_v50, %v1304_v30  ;;  %v318_v59 = vsub.f32 %v1137_v54, %v1314_v52 }
  0xcf   :  { %v787_v10 = vpop.eup %786  ;;  %558 = vmatprep.mubr.f32.mxu0 %v419_v9  ;;  %v435_v0 = vadd.f32 %v1240_v35, %v391_v20  ;;  %v434_v14 = vadd.f32 %v1242_v42, %v390_v1  ;;  %v319_v51 = vsub.f32 %v1142_v55, %v1314_v52  ;;  %v304_v55 = vsub.f32 %v1171_v13, %v1328_v49 }
  0xd0   :  { %v265_v27 = vadd.f32 1e-05, %v249_v56  ;;  %v257_v23 = vmax.f32 %v241_v36, 0.0  ;;  %v333_v48 = vmul.f32 %v787_v10, %v301_v7  ;;  %v332_v31 = vmul.f32 %v787_v10, %v300_v28  ;;  %559 = vmatmul.mubr.f32.gmra.mxu0 %v418_v17 }
  0xd1   :  { %v789_v2 = vpop.eup %788  ;;  %598 = vmatprep.mubr.f32.mxu1 %v435_v0  ;;  %v305_v52 = vsub.f32 %v1176_v16, %v1328_v49  ;;  %v320_v44 = vsub.f32 %v1181_v18, %v1338_v37  ;;  %v321_v28 = vsub.f32 %v1186_v19, %v1338_v37 }
  0xd2   :  { %794 = vrsqrt.f32 %v265_v27  ;;  %v273_v29 = vadd.f32 1e-05, %v257_v23  ;;  %v377_v45 = vmul.f32 %v1236_v22, %v333_v48  ;;  %v376_v38 = vmul.f32 %v1234_v21, %v332_v31  ;;  %599 = vmatmul.mubr.f32.gmra.mxu1 %v434_v14 }
  0xd3   :  { %v349_v41 = vmul.f32 %v789_v2, %v317_v15  ;;  %v348_v63 = vmul.f32 %v789_v2, %v316_v26 }
  0xd4   :  { %796 = vrsqrt.f32 %v273_v29  ;;  %v421_v32 = vadd.f32 %v1240_v35, %v377_v45  ;;  %v420_v33 = vadd.f32 %v1242_v42, %v376_v38 }
  0xd5   :  { %v393_v60 = vmul.f32 %v1236_v22, %v349_v41  ;;  %v392_v6 = vmul.f32 %v1234_v21, %v348_v63 }
  0xd6   :  { %563 = vmatprep.mubr.f32.mxu0 %v421_v32 }
  0xd7   :  { %v791_v46 = vpop.eup %790  ;;  %564 = vmatmul.mubr.f32.gmra.mxu0 %v420_v33  ;;  %v437_v53 = vadd.f32 %v1240_v35, %v393_v60  ;;  %v436_v57 = vadd.f32 %v1242_v42, %v392_v6 }
  0xd8   :  { %v335_v61 = vmul.f32 %v791_v46, %v303_v40  ;;  %v334_v3 = vmul.f32 %v791_v46, %v302_v39 }
  0xd9   :  { %v793_v4 = vpop.eup %792  ;;  %603 = vmatprep.mubr.f32.mxu1 %v437_v53 }
  0xda   :  { %604 = vmatmul.mubr.f32.gmra.mxu1 %v436_v57  ;;  %v379_v47 = vmul.f32 %v1236_v22, %v335_v61  ;;  %v378_v50 = vmul.f32 %v1234_v21, %v334_v3  ;;  %v351_v30 = vmul.f32 %v793_v4, %v319_v51  ;;  %v350_v62 = vmul.f32 %v793_v4, %v318_v59 }
  0xdc   :  { %v423_v34 = vadd.f32 %v1240_v35, %v379_v47  ;;  %v422_v11 = vadd.f32 %v1242_v42, %v378_v50  ;;  %v395_v54 = vmul.f32 %v1236_v22, %v351_v30  ;;  %v394_v12 = vmul.f32 %v1234_v21, %v350_v62 }
  0xde   :  { %568 = vmatprep.mubr.f32.mxu0 %v423_v34  ;;  %v439_v43 = vadd.f32 %v1240_v35, %v395_v54  ;;  %v438_v24 = vadd.f32 %v1242_v42, %v394_v12 }
  0xdf   :  { %v795_v58 = vpop.eup %794  ;;  %569 = vmatmul.mubr.f32.gmra.mxu0 %v422_v11 }
  0xe0   :  { %608 = vmatprep.mubr.f32.mxu1 %v439_v43  ;;  %v337_v5 = vmul.f32 %v795_v58, %v305_v52  ;;  %v336_v8 = vmul.f32 %v795_v58, %v304_v55 }
  0xe1   :  { %v797_v13 = vpop.eup %796  ;;  %609 = vmatmul.mubr.f32.gmra.mxu1 %v438_v24 }
  0xe2   :  { %v381_v16 = vmul.f32 %v1236_v22, %v337_v5  ;;  %v380_v49 = vmul.f32 %v1234_v21, %v336_v8  ;;  %v353_v25 = vmul.f32 %v797_v13, %v321_v28  ;;  %v352_v7 = vmul.f32 %v797_v13, %v320_v44 }
  0xe4   :  { %v425_v56 = vadd.f32 %v1240_v35, %v381_v16  ;;  %v424_v36 = vadd.f32 %v1242_v42, %v380_v49  ;;  %v397_v18 = vmul.f32 %v1236_v22, %v353_v25  ;;  %v396_v9 = vmul.f32 %v1234_v21, %v352_v7 }
  0xe6   :  { %573 = vmatprep.mubr.f32.mxu0 %v425_v56  ;;  %v441_v19 = vadd.f32 %v1240_v35, %v397_v18  ;;  %v440_v37 = vadd.f32 %v1242_v42, %v396_v9 }
  0xe7   :  { %574 = vmatmul.mubr.f32.gmra.mxu0 %v424_v36 }
  0xe8   :  { %613 = vmatprep.mubr.f32.mxu1 %v441_v19 }
  0xe9   :  { %614 = vmatmul.mubr.f32.gmra.mxu1 %v440_v37 }
 0x16e   :  { %v683_v10 = vpop.f32.mrf.mxu0 }
 0x170   :  { %v684_v17 = vpop.f32.mrf.mxu0 }
 0x171   :  { %v685_v20 = vadd.f32 %v684_v17, %v683_v10 }
 0x172   :  { %v707_v1 = vpop.f32.mrf.mxu1 }
 0x173   :  { %619 = vst [vmem:[#allocation2] sm:$0xff] %v685_v20 }
 0x174   :  { %v708_v27 = vpop.f32.mrf.mxu1 }
 0x175   :  { %v709_v23 = vadd.f32 %v708_v27, %v707_v1 }
 0x177   :  { %627 = vst [vmem:[#allocation2 + $0x40] sm:$0xff] %v709_v23 }
 0x178   :  { %v686_v48 = vpop.f32.mrf.mxu0 }
 0x17a   :  { %v687_v22 = vpop.f32.mrf.mxu0  ;;  %v710_v21 = vpop.f32.mrf.mxu1 }
 0x17b   :  { %v688_v31 = vadd.f32 %v687_v22, %v686_v48 }
 0x17c   :  { %v711_v2 = vpop.f32.mrf.mxu1 }
 0x17d   :  { %620 = vst [vmem:[#allocation2 + $0x8] sm:$0xff] %v688_v31  ;;  %v712_v35 = vadd.f32 %v711_v2, %v710_v21 }
 0x17f   :  { %628 = vst [vmem:[#allocation2 + $0x48] sm:$0xff] %v712_v35 }
 0x180   :  { %v689_v42 = vpop.f32.mrf.mxu0 }
 0x182   :  { %v690_v26 = vpop.f32.mrf.mxu0  ;;  %v713_v0 = vpop.f32.mrf.mxu1 }
 0x183   :  { %v691_v15 = vadd.f32 %v690_v26, %v689_v42 }
 0x184   :  { %v714_v14 = vpop.f32.mrf.mxu1 }
 0x185   :  { %621 = vst [vmem:[#allocation2 + $0x10] sm:$0xff] %v691_v15  ;;  %v715_v29 = vadd.f32 %v714_v14, %v713_v0 }
 0x187   :  { %629 = vst [vmem:[#allocation2 + $0x50] sm:$0xff] %v715_v29 }
 0x188   :  { %v692_v45 = vpop.f32.mrf.mxu0 }
 0x18a   :  { %v693_v38 = vpop.f32.mrf.mxu0  ;;  %v716_v63 = vpop.f32.mrf.mxu1 }
 0x18b   :  { %v694_v41 = vadd.f32 %v693_v38, %v692_v45 }
 0x18c   :  { %v717_v32 = vpop.f32.mrf.mxu1 }
 0x18d   :  { %622 = vst [vmem:[#allocation2 + $0x18] sm:$0xff] %v694_v41  ;;  %v718_v33 = vadd.f32 %v717_v32, %v716_v63 }
 0x18f   :  { %630 = vst [vmem:[#allocation2 + $0x58] sm:$0xff] %v718_v33 }
 0x190   :  { %v695_v60 = vpop.f32.mrf.mxu0 }
 0x192   :  { %v696_v6 = vpop.f32.mrf.mxu0  ;;  %v719_v40 = vpop.f32.mrf.mxu1 }
 0x193   :  { %v697_v39 = vadd.f32 %v696_v6, %v695_v60 }
 0x194   :  { %v720_v46 = vpop.f32.mrf.mxu1 }
 0x195   :  { %623 = vst [vmem:[#allocation2 + $0x20] sm:$0xff] %v697_v39  ;;  %v721_v53 = vadd.f32 %v720_v46, %v719_v40 }
 0x197   :  { %v698_v57 = vpop.f32.mrf.mxu0  ;;  %631 = vst [vmem:[#allocation2 + $0x60] sm:$0xff] %v721_v53 }
 0x199   :  { %v699_v59 = vpop.f32.mrf.mxu0 }
 0x19a   :  { %v700_v51 = vadd.f32 %v699_v59, %v698_v57  ;;  %v722_v61 = vpop.f32.mrf.mxu1 }
 0x19c   :  { %624 = vst [vmem:[#allocation2 + $0x28] sm:$0xff] %v700_v51  ;;  %v723_v3 = vpop.f32.mrf.mxu1 }
 0x19d   :  { %v724_v4 = vadd.f32 %v723_v3, %v722_v61 }
 0x19f   :  { %632 = vst [vmem:[#allocation2 + $0x68] sm:$0xff] %v724_v4  ;;  %v701_v47 = vpop.f32.mrf.mxu0 }
 0x1a1   :  { %v702_v50 = vpop.f32.mrf.mxu0  ;;  %v725_v30 = vpop.f32.mrf.mxu1 }
 0x1a2   :  { %v703_v62 = vadd.f32 %v702_v50, %v701_v47 }
 0x1a3   :  { %v726_v34 = vpop.f32.mrf.mxu1 }
 0x1a4   :  { %625 = vst [vmem:[#allocation2 + $0x30] sm:$0xff] %v703_v62  ;;  %v727_v11 = vadd.f32 %v726_v34, %v725_v30 }
 0x1a6   :  { %633 = vst [vmem:[#allocation2 + $0x70] sm:$0xff] %v727_v11 }
 0x1a7   :  { %v704_v54 = vpop.f32.mrf.mxu0 }
 0x1a9   :  { %v705_v12 = vpop.f32.mrf.mxu0  ;;  %v728_v55 = vpop.f32.mrf.mxu1 }
 0x1aa   :  { %v706_v52 = vadd.f32 %v705_v12, %v704_v54 }
 0x1ab   :  { %v729_v43 = vpop.f32.mrf.mxu1 }
 0x1ac   :  { %626 = vst [vmem:[#allocation2 + $0x38] sm:$0xff] %v706_v52  ;;  %v730_v24 = vadd.f32 %v729_v43, %v728_v55 }
 0x1ae   :  { %634 = vst [vmem:[#allocation2 + $0x78] sm:$0xff] %v730_v24 }
 0x1af   :  { %809 = shalt.err (!%p806_p4)
}
 0x1b0   :  { %s821_s16 = smov 128   ;;  %s822_s17 = smov 8  }
 0x1b1   :  { %646 = dma.vmem_to_hbm [thread:$0]  %s641_s2, 2048, %s1413_s4, [#allocation3], %s821_s16, %s821_s16, %s822_s17  }
 0x1b2   :  { %818 = dma.done.wait [#allocation3], 2048  }
 0x1b3   :  { %819 = vsyncadd [#allocation3], 4294965248 }
 0x1b4   :  { %650 = vsyncpa [#allocation3], 1 }

</bundles_post_ra>
